<compile_context>
chip_gen: v5e
topology: v5e:2x2
jax: 0.10.0
libtpu: 0.0.40
codegen_flags: <defaults>
</compile_context>

<pallas_src>
import functools

import jax
import jax.numpy as jnp
from jax.experimental import pallas as pl
from jax.experimental.pallas import tpu as pltpu


def mlp_kernel(x_ref, w1_ref, b1_ref, w2_ref, b2_ref, o_ref):
    # fc1: [tb, 784](bf16) @ [784, 500](bf16) -> f32 accumulation on the MXU
    h = jnp.dot(x_ref[...], w1_ref[...], preferred_element_type=jnp.float32)
    # bias + ReLU in f32 on the VPU (v5e VPU has no bf16 -> keep f32 here)
    h = jnp.maximum(h + b1_ref[...], 0.0)
    # fc2: cast hidden back to bf16 for the MXU, accumulate f32
    out = jnp.dot(h.astype(jnp.bfloat16), w2_ref[...],
                  preferred_element_type=jnp.float32)
    o_ref[...] = (out + b2_ref[...]).astype(o_ref.dtype)


def _round_up(x, m):
    return (x + m - 1) // m * m


@functools.partial(jax.jit, static_argnames=("block_b",))
def nn_forward(x, w1, b1, w2, b2, *, block_b=512):
    """x: [B, 784] f32; w1: [784, 500]; b1: [1, 500]; w2: [500, 10]; b2: [1, 10]."""
    B, D_in = x.shape
    D_in2, D_hid = w1.shape
    D_out = w2.shape[1]
    assert D_in == D_in2

    # bf16 for the streamed / heavy operands; f32 biases.
    x_bf = x.astype(jnp.bfloat16)
    w1_bf = w1.astype(jnp.bfloat16)
    w2_bf = w2.astype(jnp.bfloat16)
    b1_f = b1.astype(jnp.float32).reshape(1, D_hid)
    b2_f = b2.astype(jnp.float32).reshape(1, D_out)

    # Lane-dense output: pad 10 -> 128 columns (zeros), slice after the call.
    D_out_p = max(128, _round_up(D_out, 128))
    w2_p = jnp.zeros((D_hid, D_out_p), jnp.bfloat16).at[:, :D_out].set(w2_bf)
    b2_p = jnp.zeros((1, D_out_p), jnp.float32).at[:, :D_out].set(b2_f)

    # Batch tiling: pick a tile that is a multiple of 8 sublanes, pad B to a
    # multiple of it, and tile only x / out. Weights stay VMEM-resident.
    tb = min(block_b, _round_up(B, 8))
    B_p = _round_up(B, tb)
    if B_p != B:
        x_bf = jnp.pad(x_bf, ((0, B_p - B), (0, 0)))
    grid = (B_p // tb,)

    out_p = pl.pallas_call(
        mlp_kernel,
        out_shape=jax.ShapeDtypeStruct((B_p, D_out_p), jnp.float32),
        grid=grid,
        in_specs=[
            # x streams through the pipeline, one batch tile per grid step
            pl.BlockSpec((tb, D_in), lambda i: (i, 0)),
            # weights / biases: constant index_map -> DMA'd once, resident
            pl.BlockSpec((D_in, D_hid), lambda i: (0, 0)),
            pl.BlockSpec((1, D_hid), lambda i: (0, 0)),
            pl.BlockSpec((D_hid, D_out_p), lambda i: (0, 0)),
            pl.BlockSpec((1, D_out_p), lambda i: (0, 0)),
        ],
        out_specs=pl.BlockSpec((tb, D_out_p), lambda i: (i, 0)),
        compiler_params=pltpu.CompilerParams(
            # independent batch tiles -> shard across TensorCores on v7x
            dimension_semantics=("parallel",),
            vmem_limit_bytes=64 * 1024 * 1024,
        ),
    )(x_bf, w1_bf, b1_f, w2_p, b2_p)

    return out_p[:B, :D_out]


def init_params(key):
    """Deterministic init matching nn.Linear's default scheme:
    uniform(-1/sqrt(fan_in), 1/sqrt(fan_in)) for both weight and bias.
    Weights stored as [in, out] (transpose of torch's [out, in])."""
    k1, k2, k3, k4 = jax.random.split(key, 4)
    d_in, d_hid, d_out = 28 * 28, 500, 10

    bound1 = 1.0 / jnp.sqrt(d_in)
    w1 = jax.random.uniform(k1, (d_in, d_hid), jnp.float32, -bound1, bound1)
    b1 = jax.random.uniform(k2, (1, d_hid), jnp.float32, -bound1, bound1)

    bound2 = 1.0 / jnp.sqrt(d_hid)
    w2 = jax.random.uniform(k3, (d_hid, d_out), jnp.float32, -bound2, bound2)
    b2 = jax.random.uniform(k4, (1, d_out), jnp.float32, -bound2, bound2)
    return w1, b1, w2, b2


def _ref_forward(x, w1, b1, w2, b2):
    # plain-JAX f32 reference of the torch module
    return jnp.maximum(x @ w1 + b1, 0.0) @ w2 + b2


if __name__ == "__main__":
    key = jax.random.PRNGKey(0)
    kx, kp = jax.random.split(key)
    w1, b1, w2, b2 = init_params(kp)

    # Small-shape correctness check (module-consistent: B=2, 784 features).
    B = 2
    x = jax.random.normal(kx, (B, 28 * 28), jnp.float32)
    out = jax.block_until_ready(nn_forward(x, w1, b1, w2, b2))
    ref = _ref_forward(x, w1, b1, w2, b2)
    assert out.shape == (B, 10)
    # bf16 operands + f32 accumulation -> looser tolerance than pure f32.
    assert jnp.allclose(out, ref, atol=3e-2, rtol=3e-2)

    # Exercise the multi-step batch grid (weights resident across steps).
    kx2 = jax.random.fold_in(kx, 1)
    B2 = 64
    x2 = jax.random.normal(kx2, (B2, 28 * 28), jnp.float32)
    out2 = jax.block_until_ready(nn_forward(x2, w1, b1, w2, b2, block_b=16))
    ref2 = _ref_forward(x2, w1, b1, w2, b2)
    assert out2.shape == (B2, 10)
    assert jnp.allclose(out2, ref2, atol=3e-2, rtol=3e-2)

    print("KERNEL_OK")
</pallas_src>

<mosaic_0001>
module attributes {stable_mosaic.version = 11 : i64} {
  func.func @mlp_kernel(%arg0: i32, %arg1: memref<8x784xbf16, #tpu.memory_space<vmem>>, %arg2: memref<784x500xbf16, #tpu.memory_space<vmem>>, %arg3: memref<1x500xf32, #tpu.memory_space<vmem>>, %arg4: memref<500x128xbf16, #tpu.memory_space<vmem>>, %arg5: memref<1x128xf32, #tpu.memory_space<vmem>>, %arg6: memref<8x128xf32, #tpu.memory_space<vmem>>) attributes {dimension_semantics = [#tpu.dimension_semantics<parallel>], iteration_bounds = array<i64: 1>, scalar_prefetch = 0 : i64, scratch_operands = 0 : i64, tpu.core_type = #tpu.core_type<tc>, window_params = [{transform_indices = @transform_0, window_bounds = array<i64: 8, 784>}, {pipeline_mode = #tpu.pipeline_mode<synchronous>, transform_indices = @transform_1, window_bounds = array<i64: 784, 500>}, {pipeline_mode = #tpu.pipeline_mode<synchronous>, transform_indices = @transform_2, window_bounds = array<i64: 1, 500>}, {pipeline_mode = #tpu.pipeline_mode<synchronous>, transform_indices = @transform_3, window_bounds = array<i64: 500, 128>}, {pipeline_mode = #tpu.pipeline_mode<synchronous>, transform_indices = @transform_4, window_bounds = array<i64: 1, 128>}, {transform_indices = @transform_5, window_bounds = array<i64: 8, 128>}]} {
    %c0 = arith.constant 0 : index
    %c0_0 = arith.constant 0 : index
    %0 = vector.load %arg1[%c0, %c0_0] : memref<8x784xbf16, #tpu.memory_space<vmem>>, vector<8x784xbf16>
    %c0_1 = arith.constant 0 : index
    %c0_2 = arith.constant 0 : index
    %1 = vector.load %arg2[%c0_1, %c0_2] : memref<784x500xbf16, #tpu.memory_space<vmem>>, vector<784x500xbf16>
    %cst = arith.constant dense<0.000000e+00> : vector<8x500xf32>
    %2 = tpu.matmul %0, %1, %cst {dimension_numbers = #tpu.dot_dimension_numbers<[1], [0], [0], [1], [0, 0, 1, 1], [], []>} : vector<8x784xbf16>, vector<784x500xbf16>, vector<8x500xf32> -> vector<8x500xf32>
    %c0_3 = arith.constant 0 : index
    %c0_4 = arith.constant 0 : index
    %3 = vector.load %arg3[%c0_3, %c0_4] : memref<1x500xf32, #tpu.memory_space<vmem>>, vector<1x500xf32>
    %4 = vector.broadcast %3 : vector<1x500xf32> to vector<8x500xf32>
    %5 = arith.addf %2, %4 : vector<8x500xf32>
    %cst_5 = arith.constant 0.000000e+00 : f32
    %6 = vector.broadcast %cst_5 : f32 to vector<8x500xf32>
    %7 = arith.maximumf %5, %6 : vector<8x500xf32>
    %8 = arith.truncf %7 : vector<8x500xf32> to vector<8x500xbf16>
    %c0_6 = arith.constant 0 : index
    %c0_7 = arith.constant 0 : index
    %9 = vector.load %arg4[%c0_6, %c0_7] : memref<500x128xbf16, #tpu.memory_space<vmem>>, vector<500x128xbf16>
    %cst_8 = arith.constant dense<0.000000e+00> : vector<8x128xf32>
    %10 = tpu.matmul %8, %9, %cst_8 {dimension_numbers = #tpu.dot_dimension_numbers<[1], [0], [0], [1], [0, 0, 1, 1], [], []>} : vector<8x500xbf16>, vector<500x128xbf16>, vector<8x128xf32> -> vector<8x128xf32>
    %c0_9 = arith.constant 0 : index
    %c0_10 = arith.constant 0 : index
    %11 = vector.load %arg5[%c0_9, %c0_10] : memref<1x128xf32, #tpu.memory_space<vmem>>, vector<1x128xf32>
    %12 = vector.broadcast %11 : vector<1x128xf32> to vector<8x128xf32>
    %13 = arith.addf %10, %12 : vector<8x128xf32>
    %c0_11 = arith.constant 0 : index
    %c0_12 = arith.constant 0 : index
    %14 = vector.load %arg6[%c0_11, %c0_12] : memref<8x128xf32, #tpu.memory_space<vmem>>, vector<8x128xf32>
    tpu.vector_store %arg6[%c0_11, %c0_12], %13 {strides = array<i32>} : memref<8x128xf32, #tpu.memory_space<vmem>>, vector<8x128xf32>,
    return
  }
  func.func @transform_0(%arg0: i32) -> (i32, i32) {
    %c0_i32 = arith.constant 0 : i32
    %c0_i32_0 = arith.constant 0 : i32
    return %arg0, %c0_i32 : i32, i32
  }
  func.func @transform_1(%arg0: i32) -> (i32, i32) {
    %c0_i32 = arith.constant 0 : i32
    %c0_i32_0 = arith.constant 0 : i32
    %c0_i32_1 = arith.constant 0 : i32
    return %c0_i32, %c0_i32_0 : i32, i32
  }
  func.func @transform_2(%arg0: i32) -> (i32, i32) {
    %c0_i32 = arith.constant 0 : i32
    %c0_i32_0 = arith.constant 0 : i32
    %c0_i32_1 = arith.constant 0 : i32
    return %c0_i32, %c0_i32_0 : i32, i32
  }
  func.func @transform_3(%arg0: i32) -> (i32, i32) {
    %c0_i32 = arith.constant 0 : i32
    %c0_i32_0 = arith.constant 0 : i32
    %c0_i32_1 = arith.constant 0 : i32
    return %c0_i32, %c0_i32_0 : i32, i32
  }
  func.func @transform_4(%arg0: i32) -> (i32, i32) {
    %c0_i32 = arith.constant 0 : i32
    %c0_i32_0 = arith.constant 0 : i32
    %c0_i32_1 = arith.constant 0 : i32
    return %c0_i32, %c0_i32_0 : i32, i32
  }
  func.func @transform_5(%arg0: i32) -> (i32, i32) {
    %c0_i32 = arith.constant 0 : i32
    %c0_i32_0 = arith.constant 0 : i32
    return %arg0, %c0_i32 : i32, i32
  }
}

</mosaic_0001>

<bundles_post_ra>
// kernel: nn_forward.1
= control target key start
LH: loop header
LB: loop body
LE: loop exit
PB: predicated region body
PF: predicated region fallthrough
CT: control target
= control target key end

     0   :  { %vm1235_vm0 = vcmask 130048   ;;  %vm1871_vm1 = vcmask 1041408   ;;  %vm1867_vm2 = vcmask 949248   ;;  %s4460_s1 = inlined_call_operand.vmem [shape: bf16[784,500], index: 1, kind: input, shape index: {}]   ;;  %s4461_s0 = inlined_call_operand.vmem [shape: bf16[8,784], index: 0, kind: input, shape index: {}]   ;;  %s4462_s2 = inlined_call_operand.vmem [shape: f32[1,500], index: 2, kind: input, shape index: {}]   ;;  %s4463_s3 = inlined_call_operand.vmem [shape: bf16[500,128], index: 3, kind: input, shape index: {}]   ;;  %s4464_s4 = inlined_call_operand.vmem [shape: f32[1,128], index: 4, kind: input, shape index: {}]   ;;  %s4465_s5 = inlined_call_operand.vmem [shape: f32[8,128], index: 5, kind: output, shape index: {}]  }
   0x1   :  { %v2046_v0 = vld [vmem:[%s4460_s1 + $0xe0] sm:$0xf]  ;;  %v2875_v1 = vld [vmem:[%s4460_s1 + $0xec] sm:$0xf0] }
   0x2   :  { %v2174_v2 = vld [vmem:[%s4460_s1 + $0x1e0] sm:$0xf]  ;;  %v2047_v3 = vor.u32 %v2875_v1, %v2046_v0  ;;  %v2907_v4 = vld [vmem:[%s4460_s1 + $0x1ec] sm:$0xf0] }
   0x3   :  { %v2302_v5 = vld [vmem:[%s4460_s1 + $0x2e0] sm:$0xf]  ;;  %v2939_v6 = vld [vmem:[%s4460_s1 + $0x2ec] sm:$0xf0]  ;;  %v2175_v7 = vor.u32 %v2907_v4, %v2174_v2 }
   0x4   :  { %v2303_v8 = vor.u32 %v2939_v6, %v2302_v5  ;;  %v2430_v9 = vld [vmem:[%s4460_s1 + $0x3e0] sm:$0xf]  ;;  %v2971_v10 = vld [vmem:[%s4460_s1 + $0x3ec] sm:$0xf0]  ;;  %1239 = vmatpush.bf16.msra.mxu0 %v2047_v3 }
   0x5   :  { %v2030_v11 = vld [vmem:[%s4460_s1 + $0xc0] sm:$0xf]  ;;  %v2431_v12 = vor.u32 %v2971_v10, %v2430_v9  ;;  %v2871_v13 = vld [vmem:[%s4460_s1 + $0xcc] sm:$0xf0]  ;;  %1252 = vmatpush.bf16.msra.mxu1 %v2175_v7 }
   0x6   :  { %v2158_v14 = vld [vmem:[%s4460_s1 + $0x1c0] sm:$0xf]  ;;  %v2903_v15 = vld [vmem:[%s4460_s1 + $0x1cc] sm:$0xf0]  ;;  %1265 = vmatpush.bf16.msra.mxu2 %v2303_v8  ;;  %v2031_v16 = vor.u32 %v2871_v13, %v2030_v11 }
   0x7   :  { %v2159_v17 = vor.u32 %v2903_v15, %v2158_v14  ;;  %v2286_v18 = vld [vmem:[%s4460_s1 + $0x2c0] sm:$0xf]  ;;  %v2935_v19 = vld [vmem:[%s4460_s1 + $0x2cc] sm:$0xf0]  ;;  %1278 = vmatpush.bf16.msra.mxu3 %v2431_v12 }
   0x8   :  { %v2414_v20 = vld [vmem:[%s4460_s1 + $0x3c0] sm:$0xf]  ;;  %v2287_v21 = vor.u32 %v2935_v19, %v2286_v18  ;;  %v2967_v22 = vld [vmem:[%s4460_s1 + $0x3cc] sm:$0xf0]  ;;  %1240 = vmatpush.bf16.msra.mxu0 %v2031_v16 }
   0x9   :  { %v2014_v23 = vld [vmem:[%s4460_s1 + $0xa0] sm:$0xf]  ;;  %v2867_v24 = vld [vmem:[%s4460_s1 + $0xac] sm:$0xf0]  ;;  %v2415_v25 = vor.u32 %v2967_v22, %v2414_v20  ;;  %1253 = vmatpush.bf16.msra.mxu1 %v2159_v17 }
   0xa   :  { %v2142_v26 = vld [vmem:[%s4460_s1 + $0x1a0] sm:$0xf]  ;;  %v2899_v27 = vld [vmem:[%s4460_s1 + $0x1ac] sm:$0xf0]  ;;  %v2015_v29 = vor.u32 %v2867_v24, %v2014_v23  ;;  %1266 = vmatpush.bf16.msra.mxu2 %v2287_v21 }
   0xb   :  { %v2270_v28 = vld [vmem:[%s4460_s1 + $0x2a0] sm:$0xf]  ;;  %v2931_v30 = vld [vmem:[%s4460_s1 + $0x2ac] sm:$0xf0]  ;;  %v2143_v33 = vor.u32 %v2899_v27, %v2142_v26  ;;  %1279 = vmatpush.bf16.msra.mxu3 %v2415_v25  ;;  %v22_v25 = vld [vmem:[%s4461_s0 + $0x8] sm:$0xff] }
   0xc   :  { %v2398_v31 = vld [vmem:[%s4460_s1 + $0x3a0] sm:$0xf]  ;;  %v2963_v32 = vld [vmem:[%s4460_s1 + $0x3ac] sm:$0xf0]  ;;  %v2271_v34 = vor.u32 %v2931_v30, %v2270_v28  ;;  %1241 = vmatpush.bf16.msra.mxu0 %v2015_v29 }
   0xd   :  { %v1998_v35 = vld [vmem:[%s4460_s1 + $0x80] sm:$0xf]  ;;  %v2863_v36 = vld [vmem:[%s4460_s1 + $0x8c] sm:$0xf0]  ;;  %v2399_v38 = vor.u32 %v2963_v32, %v2398_v31  ;;  %1254 = vmatpush.bf16.msra.mxu1 %v2143_v33 }
   0xe   :  { %v2126_v37 = vld [vmem:[%s4460_s1 + $0x180] sm:$0xf]  ;;  %v2895_v39 = vld [vmem:[%s4460_s1 + $0x18c] sm:$0xf0]  ;;  %v1999_v44 = vor.u32 %v2863_v36, %v1998_v35  ;;  %1267 = vmatpush.bf16.msra.mxu2 %v2271_v34  ;;  %v2873_v34 = vld [vmem:[%s4460_s1 + $0xe4] sm:$0xf]  ;;  %v237_v36 = vunpack.c.l.b16 %v22_v25 }
   0xf   :  { %v2254_v40 = vld [vmem:[%s4460_s1 + $0x280] sm:$0xf]  ;;  %v2927_v41 = vld [vmem:[%s4460_s1 + $0x28c] sm:$0xf0]  ;;  %v2127_v45 = vor.u32 %v2895_v39, %v2126_v37  ;;  %1280 = vmatpush.bf16.msra.mxu3 %v2399_v38  ;;  %v2048_v35 = vld [vmem:[%s4460_s1 + $0xf0] sm:$0xf0] }
  0x10   :  { %v2382_v42 = vld [vmem:[%s4460_s1 + $0x380] sm:$0xf]  ;;  %v2959_v43 = vld [vmem:[%s4460_s1 + $0x38c] sm:$0xf0]  ;;  %v2255_v46 = vor.u32 %v2927_v41, %v2254_v40  ;;  %1242 = vmatpush.bf16.msra.mxu0 %v1999_v44 }
  0x11   :  { %v1982_v47 = vld [vmem:[%s4460_s1 + $0x60] sm:$0xf]  ;;  %v2859_v48 = vld [vmem:[%s4460_s1 + $0x6c] sm:$0xf0]  ;;  %v2383_v50 = vor.u32 %v2959_v43, %v2382_v42  ;;  %1255 = vmatpush.bf16.msra.mxu1 %v2127_v45  ;;  %v238_v42 = vunpack.c.h.b16 %v22_v25  ;;  %v2893_v25 = vld [vmem:[%s4460_s1 + $0x184] sm:$0xf] }
  0x12   :  { %v2110_v49 = vld [vmem:[%s4460_s1 + $0x160] sm:$0xf]  ;;  %v2891_v51 = vld [vmem:[%s4460_s1 + $0x16c] sm:$0xf0]  ;;  %v1983_v56 = vor.u32 %v2859_v48, %v1982_v47  ;;  %1268 = vmatpush.bf16.msra.mxu2 %v2255_v46  ;;  %v2905_v46 = vld [vmem:[%s4460_s1 + $0x1e4] sm:$0xf] }
  0x13   :  { %v2238_v52 = vld [vmem:[%s4460_s1 + $0x260] sm:$0xf]  ;;  %v2923_v53 = vld [vmem:[%s4460_s1 + $0x26c] sm:$0xf0]  ;;  %v2111_v57 = vor.u32 %v2891_v51, %v2110_v49  ;;  %1281 = vmatpush.bf16.msra.mxu3 %v2383_v50  ;;  %v2176_v47 = vld [vmem:[%s4460_s1 + $0x1f0] sm:$0xf0]  ;;  %v2051_v49 = vor.u32 %v2873_v34, %v2048_v35 }
  0x14   :  { %v2366_v54 = vld [vmem:[%s4460_s1 + $0x360] sm:$0xf]  ;;  %v2955_v55 = vld [vmem:[%s4460_s1 + $0x36c] sm:$0xf0]  ;;  %v2239_v58 = vor.u32 %v2923_v53, %v2238_v52  ;;  %1243 = vmatpush.bf16.msra.mxu0 %v1983_v56  ;;  %v3340_v53 = vpack.c.b16 %v237_v36, %v237_v36  ;;  %v2032_v56 = vld [vmem:[%s4460_s1 + $0xd0] sm:$0xf0] }
  0x15   :  { %v1966_v59 = vld [vmem:[%s4460_s1 + $0x40] sm:$0xf]  ;;  %v2855_v60 = vld [vmem:[%s4460_s1 + $0x4c] sm:$0xf0]  ;;  %v2367_v62 = vor.u32 %v2955_v55, %v2366_v54  ;;  %1256 = vmatpush.bf16.msra.mxu1 %v2111_v57  ;;  %v2869_v55 = vld [vmem:[%s4460_s1 + $0xc4] sm:$0xf] }
  0x16   :  { %v2094_v61 = vld [vmem:[%s4460_s1 + $0x140] sm:$0xf]  ;;  %v2887_v63 = vld [vmem:[%s4460_s1 + $0x14c] sm:$0xf0]  ;;  %v1967_v4 = vor.u32 %v2855_v60, %v1966_v59  ;;  %1269 = vmatpush.bf16.msra.mxu2 %v2239_v58  ;;  %v3353_v60 = vpack.c.b16 %v238_v42, %v238_v42  ;;  %v1984_v34 = vld [vmem:[%s4460_s1 + $0x70] sm:$0xf0] }
  0x17   :  { %v2222_v0 = vld [vmem:[%s4460_s1 + $0x240] sm:$0xf]  ;;  %v2919_v1 = vld [vmem:[%s4460_s1 + $0x24c] sm:$0xf0]  ;;  %v2095_v5 = vor.u32 %v2887_v63, %v2094_v61  ;;  %1282 = vmatpush.bf16.msra.mxu3 %v2367_v62  ;;  %v2179_v61 = vor.u32 %v2905_v46, %v2176_v47  ;;  %v2901_v63 = vld [vmem:[%s4460_s1 + $0x1c4] sm:$0xf] }
  0x18   :  { %v2350_v2 = vld [vmem:[%s4460_s1 + $0x340] sm:$0xf]  ;;  %v2951_v3 = vld [vmem:[%s4460_s1 + $0x34c] sm:$0xf0]  ;;  %v2223_v6 = vor.u32 %v2919_v1, %v2222_v0  ;;  %1244 = vmatpush.bf16.msra.mxu0 %v1967_v4  ;;  %v2160_v0 = vld [vmem:[%s4460_s1 + $0x1d0] sm:$0xf0] }
  0x19   :  { %v1950_v7 = vld [vmem:[%s4460_s1 + $0x20] sm:$0xf]  ;;  %v2851_v8 = vld [vmem:[%s4460_s1 + $0x2c] sm:$0xf0]  ;;  %v2351_v10 = vor.u32 %v2951_v3, %v2350_v2  ;;  %1257 = vmatpush.bf16.msra.mxu1 %v2095_v5  ;;  %v2035_v2 = vor.u32 %v2869_v55, %v2032_v56  ;;  %v2853_v46 = vld [vmem:[%s4460_s1 + $0x44] sm:$0xf] }
  0x1a   :  { %v2078_v9 = vld [vmem:[%s4460_s1 + $0x120] sm:$0xf]  ;;  %v2883_v11 = vld [vmem:[%s4460_s1 + $0x12c] sm:$0xf0]  ;;  %v1951_v17 = vor.u32 %v2851_v8, %v1950_v7  ;;  %1270 = vmatpush.bf16.msra.mxu2 %v2223_v6  ;;  %v2865_v7 = vld [vmem:[%s4460_s1 + $0xa4] sm:$0xf] }
  0x1b   :  { %v2206_v12 = vld [vmem:[%s4460_s1 + $0x220] sm:$0xf]  ;;  %v2915_v13 = vld [vmem:[%s4460_s1 + $0x22c] sm:$0xf0]  ;;  %v2079_v21 = vor.u32 %v2883_v11, %v2078_v9  ;;  %1283 = vmatpush.bf16.msra.mxu3 %v2351_v10  ;;  %v2016_v8 = vld [vmem:[%s4460_s1 + $0xb0] sm:$0xf0]  ;;  %v2163_v10 = vor.u32 %v2901_v63, %v2160_v0 }
  0x1c   :  { %v2334_v14 = vld [vmem:[%s4460_s1 + $0x320] sm:$0xf]  ;;  %v2947_v15 = vld [vmem:[%s4460_s1 + $0x32c] sm:$0xf0]  ;;  %v2207_v22 = vor.u32 %v2915_v13, %v2206_v12  ;;  %1245 = vmatpush.bf16.msra.mxu0 %v1951_v17  ;;  %v2897_v12 = vld [vmem:[%s4460_s1 + $0x1a4] sm:$0xf] }
  0x1d   :  { %v1934_v16 = vld [vmem:[%s4460_s1] sm:$0xf]  ;;  %v2847_v18 = vld [vmem:[%s4460_s1 + $0xc] sm:$0xf0]  ;;  %v2335_v26 = vor.u32 %v2947_v15, %v2334_v14  ;;  %1258 = vmatpush.bf16.msra.mxu1 %v2079_v21  ;;  %v2144_v13 = vld [vmem:[%s4460_s1 + $0x1b0] sm:$0xf0]  ;;  %v2019_v15 = vor.u32 %v2865_v7, %v2016_v8 }
  0x1e   :  { %v2062_v19 = vld [vmem:[%s4460_s1 + $0x100] sm:$0xf]  ;;  %v2879_v20 = vld [vmem:[%s4460_s1 + $0x10c] sm:$0xf0]  ;;  %v1935_v33 = vor.u32 %v2847_v18, %v1934_v16  ;;  %1271 = vmatpush.bf16.msra.mxu2 %v2207_v22  ;;  %v2000_v21 = vld [vmem:[%s4460_s1 + $0x90] sm:$0xf0] }
  0x1f   :  { %v2190_v23 = vld [vmem:[%s4460_s1 + $0x200] sm:$0xf]  ;;  %v2911_v24 = vld [vmem:[%s4460_s1 + $0x20c] sm:$0xf0]  ;;  %v2063_v38 = vor.u32 %v2879_v20, %v2062_v19  ;;  %1284 = vmatpush.bf16.msra.mxu3 %v2335_v26  ;;  %v2861_v20 = vld [vmem:[%s4460_s1 + $0x84] sm:$0xf] }
  0x20   :  { %v2318_v27 = vld [vmem:[%s4460_s1 + $0x300] sm:$0xf]  ;;  %v2943_v28 = vld [vmem:[%s4460_s1 + $0x30c] sm:$0xf0]  ;;  %v2191_v39 = vor.u32 %v2911_v24, %v2190_v23  ;;  %1246 = vmatpush.bf16.msra.mxu0 %v1935_v33  ;;  %v24_v22 = vld [vmem:[%s4461_s0 + $0x18] sm:$0xf]  ;;  %v2147_v23 = vor.u32 %v2897_v12, %v2144_v13 }
  0x21   :  { %v2558_v29 = vld [vmem:[%s4460_s1 + $0x4e0] sm:$0xf]  ;;  %v3003_v30 = vld [vmem:[%s4460_s1 + $0x4ec] sm:$0xf0]  ;;  %v2319_v43 = vor.u32 %v2943_v28, %v2318_v27  ;;  %1259 = vmatpush.bf16.msra.mxu1 %v2063_v38  ;;  %v2128_v26 = vld [vmem:[%s4460_s1 + $0x190] sm:$0xf0]  ;;  %v2003_v28 = vor.u32 %v2861_v20, %v2000_v21  ;;  %v241_v35 = vunpack.c.l.b16 %v24_v22 }
  0x22   :  { %v2686_v31 = vld [vmem:[%s4460_s1 + $0x5e0] sm:$0xf]  ;;  %v3035_v32 = vld [vmem:[%s4460_s1 + $0x5ec] sm:$0xf0]  ;;  %v2559_v44 = vor.u32 %v3003_v30, %v2558_v29  ;;  %1272 = vmatpush.bf16.msra.mxu2 %v2191_v39  ;;  %v2857_v33 = vld [vmem:[%s4460_s1 + $0x64] sm:$0xf]  ;;  %v2131_v36 = vor.u32 %v2893_v25, %v2128_v26 }
  0x23   :  { %v21_v37 = vld [vmem:[%s4461_s0] sm:$0xff]  ;;  %v3039_v45 = vld [vmem:[%s4460_s1 + $0x60c] sm:$0xf0]  ;;  %v2687_v48 = vor.u32 %v3035_v32, %v2686_v31  ;;  %1285 = vmatpush.bf16.msra.mxu3 %v2319_v43  ;;  %v2112_v39 = vld [vmem:[%s4460_s1 + $0x170] sm:$0xf0] }
  0x24   :  { %v2702_v40 = vld [vmem:[%s4460_s1 + $0x600] sm:$0xf]  ;;  %v235_v41 = vunpack.c.l.b16 %v21_v37  ;;  %v2999_v51 = vld [vmem:[%s4460_s1 + $0x4cc] sm:$0xf0]  ;;  %v236_v58 = vunpack.c.h.b16 %v21_v37  ;;  %1291 = vmatpush.bf16.msrb.mxu0 %v2559_v44  ;;  %v2889_v38 = vld [vmem:[%s4460_s1 + $0x164] sm:$0xf] }
  0x25   :  { %v2542_v50 = vld [vmem:[%s4460_s1 + $0x4c0] sm:$0xf]  ;;  %v3031_v54 = vld [vmem:[%s4460_s1 + $0x5cc] sm:$0xf0]  ;;  %v2703_v59 = vor.u32 %v3039_v45, %v2702_v40  ;;  %1304 = vmatpush.bf16.msrb.mxu1 %v2687_v48  ;;  %1273 = vmatmul.bf16.vlgmr.msra.gmra.mxu2 %v3340_v53  ;;  %v1968_v47 = vld [vmem:[%s4460_s1 + $0x50] sm:$0xf0]  ;;  %v3460_v48 = vpack.c.b16 %v241_v35, %v241_v35 }
  0x26   :  { %v2670_v52 = vld [vmem:[%s4460_s1 + $0x5c0] sm:$0xf]  ;;  %v3351_v57 = vpack.c.b16 %v235_v41, %v235_v41  ;;  %v2543_v62 = vor.u32 %v2999_v51, %v2542_v50  ;;  %v2995_v4 = vld [vmem:[%s4460_s1 + $0x4ac] sm:$0xf0]  ;;  %v3381_v9 = vpack.c.b16 %v236_v58, %v236_v58  ;;  %1286 = vmatmul.bf16.vlgmr.msra.gmra.mxu3 %v3353_v60  ;;  %v1987_v41 = vor.u32 %v2857_v33, %v1984_v34  ;;  %v2885_v51 = vld [vmem:[%s4460_s1 + $0x144] sm:$0xf] }
  0x27   :  { %1330 = vmatpush.bf16.msrb.mxu3 %v2051_v49  ;;  %v2671_v1 = vor.u32 %v3031_v54, %v2670_v52  ;;  %v2526_v3 = vld [vmem:[%s4460_s1 + $0x4a0] sm:$0xf]  ;;  %v3027_v6 = vld [vmem:[%s4460_s1 + $0x5ac] sm:$0xf0]  ;;  %1324 = vmatpush.bf16.msrb.mxu2 %v2703_v59  ;;  %v2115_v49 = vor.u32 %v2889_v38, %v2112_v39  ;;  %v2096_v52 = vld [vmem:[%s4460_s1 + $0x150] sm:$0xf0]  ;;  %v1971_v55 = vor.u32 %v2853_v46, %v1968_v47 }
  0x28   :  { %v2654_v5 = vld [vmem:[%s4460_s1 + $0x5a0] sm:$0xf]  ;;  %1247 = vmatmul.bf16.vlgmr.msra.gmra.mxu0 %v3351_v57  ;;  %v2527_v11 = vor.u32 %v2995_v4, %v2526_v3  ;;  %v2991_v17 = vld [vmem:[%s4460_s1 + $0x48c] sm:$0xf0]  ;;  %1260 = vmatmul.bf16.vlgmr.msra.gmra.mxu1 %v3381_v9  ;;  %v1952_v63 = vld [vmem:[%s4460_s1 + $0x30] sm:$0xf0] }
  0x29   :  { %1292 = vmatpush.bf16.msrb.mxu0 %v2543_v62  ;;  %1305 = vmatpush.bf16.msrb.mxu1 %v2671_v1  ;;  %v2655_v14 = vor.u32 %v3027_v6, %v2654_v5  ;;  %v2510_v16 = vld [vmem:[%s4460_s1 + $0x480] sm:$0xf]  ;;  %v3023_v19 = vld [vmem:[%s4460_s1 + $0x58c] sm:$0xf0]  ;;  %v2849_v62 = vld [vmem:[%s4460_s1 + $0x24] sm:$0xf]  ;;  %v2099_v1 = vor.u32 %v2885_v51, %v2096_v52 }
  0x2a   :  { %v2638_v18 = vld [vmem:[%s4460_s1 + $0x580] sm:$0xf]  ;;  %v2511_v24 = vor.u32 %v2991_v17, %v2510_v16  ;;  %v2987_v30 = vld [vmem:[%s4460_s1 + $0x46c] sm:$0xf0]  ;;  %v2881_v0 = vld [vmem:[%s4460_s1 + $0x124] sm:$0xf]  ;;  %v1955_v7 = vor.u32 %v2849_v62, %v1952_v63 }
  0x2b   :  { %1343 = vmatpush.bf16.msra.mxu2 %v2179_v61  ;;  %1331 = vmatpush.bf16.msrb.mxu3 %v2035_v2  ;;  %v2639_v27 = vor.u32 %v3023_v19, %v2638_v18  ;;  %v2494_v29 = vld [vmem:[%s4460_s1 + $0x460] sm:$0xf]  ;;  %v3019_v32 = vld [vmem:[%s4460_s1 + $0x56c] sm:$0xf0]  ;;  %v2080_v3 = vld [vmem:[%s4460_s1 + $0x130] sm:$0xf0] }
  0x2c   :  { %v2622_v31 = vld [vmem:[%s4460_s1 + $0x560] sm:$0xf]  ;;  %v2495_v37 = vor.u32 %v2987_v30, %v2494_v29  ;;  %v2983_v43 = vld [vmem:[%s4460_s1 + $0x44c] sm:$0xf0]  ;;  %v2845_v12 = vld [vmem:[%s4460_s1 + $0x4] sm:$0xf]  ;;  %v2083_v19 = vor.u32 %v2881_v0, %v2080_v3 }
  0x2d   :  { %1293 = vmatpush.bf16.msrb.mxu0 %v2527_v11  ;;  %1306 = vmatpush.bf16.msrb.mxu1 %v2655_v14  ;;  %v2623_v40 = vor.u32 %v3019_v32, %v2622_v31  ;;  %v2478_v42 = vld [vmem:[%s4460_s1 + $0x440] sm:$0xf]  ;;  %v3015_v45 = vld [vmem:[%s4460_s1 + $0x54c] sm:$0xf0]  ;;  %v1936_v13 = vld [vmem:[%s4460_s1 + $0x10] sm:$0xf0] }
  0x2e   :  { %v2606_v44 = vld [vmem:[%s4460_s1 + $0x540] sm:$0xf]  ;;  %v2479_v50 = vor.u32 %v2983_v43, %v2478_v42  ;;  %v2979_v58 = vld [vmem:[%s4460_s1 + $0x42c] sm:$0xf0]  ;;  %v2937_v14 = vld [vmem:[%s4460_s1 + $0x2e4] sm:$0xf]  ;;  %v1939_v25 = vor.u32 %v2845_v12, %v1936_v13 }
  0x2f   :  { %1344 = vmatpush.bf16.msra.mxu2 %v2163_v10  ;;  %1332 = vmatpush.bf16.msrb.mxu3 %v2019_v15  ;;  %v2607_v54 = vor.u32 %v3015_v45, %v2606_v44  ;;  %v2462_v56 = vld [vmem:[%s4460_s1 + $0x420] sm:$0xf]  ;;  %v3011_v61 = vld [vmem:[%s4460_s1 + $0x52c] sm:$0xf0]  ;;  %v2304_v15 = vld [vmem:[%s4460_s1 + $0x2f0] sm:$0xf0] }
  0x30   :  { %v2590_v59 = vld [vmem:[%s4460_s1 + $0x520] sm:$0xf]  ;;  %v2463_v2 = vor.u32 %v2979_v58, %v2462_v56  ;;  %v23_v5 = vld [vmem:[%s4461_s0 + $0x10] sm:$0xff]  ;;  %v2969_v16 = vld [vmem:[%s4460_s1 + $0x3e4] sm:$0xf] }
  0x31   :  { %1294 = vmatpush.bf16.msrb.mxu0 %v2511_v24  ;;  %1307 = vmatpush.bf16.msrb.mxu1 %v2639_v27  ;;  %v2446_v4 = vld [vmem:[%s4460_s1 + $0x400] sm:$0xf]  ;;  %v2591_v6 = vor.u32 %v3011_v61, %v2590_v59  ;;  %v2975_v8 = vld [vmem:[%s4460_s1 + $0x40c] sm:$0xf0]  ;;  %v2432_v17 = vld [vmem:[%s4460_s1 + $0x3f0] sm:$0xf0]  ;;  %v239_v18 = vunpack.c.l.b16 %v23_v5 }
  0x32   :  { %v2574_v10 = vld [vmem:[%s4460_s1 + $0x500] sm:$0xf]  ;;  %v3007_v11 = vld [vmem:[%s4460_s1 + $0x50c] sm:$0xf0]  ;;  %v2447_v20 = vor.u32 %v2975_v8, %v2446_v4  ;;  %v3001_v21 = vld [vmem:[%s4460_s1 + $0x4e4] sm:$0xf]  ;;  %v2435_v29 = vor.u32 %v2969_v16, %v2432_v17 }
  0x33   :  { %1345 = vmatpush.bf16.msra.mxu2 %v2147_v23  ;;  %1333 = vmatpush.bf16.msrb.mxu3 %v2003_v28  ;;  %v2560_v22 = vld [vmem:[%s4460_s1 + $0x4f0] sm:$0xf0]  ;;  %v240_v23 = vunpack.c.h.b16 %v23_v5  ;;  %v2575_v24 = vor.u32 %v3007_v11, %v2574_v10  ;;  %v2877_v26 = vld [vmem:[%s4460_s1 + $0x104] sm:$0xf]  ;;  %v2307_v28 = vor.u32 %v2937_v14, %v2304_v15  ;;  %v3548_v34 = vpack.c.b16 %v239_v18, %v239_v18 }
  0x34   :  { %v2064_v27 = vld [vmem:[%s4460_s1 + $0x110] sm:$0xf0]  ;;  %v3033_v30 = vld [vmem:[%s4460_s1 + $0x5e4] sm:$0xf]  ;;  %v2563_v33 = vor.u32 %v3001_v21, %v2560_v22 }
  0x35   :  { %1295 = vmatpush.bf16.msrb.mxu0 %v2495_v37  ;;  %1308 = vmatpush.bf16.msrb.mxu1 %v2623_v40  ;;  %v2688_v31 = vld [vmem:[%s4460_s1 + $0x5f0] sm:$0xf0]  ;;  %v2933_v32 = vld [vmem:[%s4460_s1 + $0x2c4] sm:$0xf]  ;;  %v2067_v38 = vor.u32 %v2877_v26, %v2064_v27  ;;  %v3559_v39 = vpack.c.b16 %v240_v23, %v240_v23 }
  0x36   :  { %2716 = vmatmul.msk.bf16.vlgmr.msrb.gmra.mxu2 %vm1235_vm0, %v3460_v48  ;;  %v2288_v35 = vld [vmem:[%s4460_s1 + $0x2d0] sm:$0xf0]  ;;  %v2997_v40 = vld [vmem:[%s4460_s1 + $0x4c4] sm:$0xf]  ;;  %v2691_v42 = vor.u32 %v3033_v30, %v2688_v31 }
  0x37   :  { %1346 = vmatpush.bf16.msra.mxu2 %v2131_v36  ;;  %1334 = vmatpush.bf16.msrb.mxu3 %v1987_v41  ;;  %v2965_v36 = vld [vmem:[%s4460_s1 + $0x3c4] sm:$0xf]  ;;  %v2416_v37 = vld [vmem:[%s4460_s1 + $0x3d0] sm:$0xf0]  ;;  %v2291_v43 = vor.u32 %v2933_v32, %v2288_v35 }
  0x38   :  { %v2544_v41 = vld [vmem:[%s4460_s1 + $0x4d0] sm:$0xf0]  ;;  %v2419_v44 = vor.u32 %v2965_v36, %v2416_v37  ;;  %v3029_v45 = vld [vmem:[%s4460_s1 + $0x5c4] sm:$0xf] }
  0x39   :  { %1296 = vmatpush.bf16.msrb.mxu0 %v2479_v50  ;;  %1309 = vmatpush.bf16.msrb.mxu1 %v2607_v54  ;;  %v2672_v46 = vld [vmem:[%s4460_s1 + $0x5d0] sm:$0xf0]  ;;  %v2929_v47 = vld [vmem:[%s4460_s1 + $0x2a4] sm:$0xf] }
  0x3a   :  { %v2272_v50 = vld [vmem:[%s4460_s1 + $0x2b0] sm:$0xf0]  ;;  %v2961_v51 = vld [vmem:[%s4460_s1 + $0x3a4] sm:$0xf]  ;;  %v2675_v56 = vor.u32 %v3029_v45, %v2672_v46 }
  0x3b   :  { %1347 = vmatpush.bf16.msra.mxu2 %v2115_v49  ;;  %1335 = vmatpush.bf16.msrb.mxu3 %v1971_v55  ;;  %v2547_v49 = vor.u32 %v2997_v40, %v2544_v41  ;;  %v2400_v52 = vld [vmem:[%s4460_s1 + $0x3b0] sm:$0xf0]  ;;  %v2993_v54 = vld [vmem:[%s4460_s1 + $0x4a4] sm:$0xf]  ;;  %v2275_v58 = vor.u32 %v2929_v47, %v2272_v50 }
  0x3c   :  { %v2528_v55 = vld [vmem:[%s4460_s1 + $0x4b0] sm:$0xf0]  ;;  %v2403_v59 = vor.u32 %v2961_v51, %v2400_v52  ;;  %v3025_v61 = vld [vmem:[%s4460_s1 + $0x5a4] sm:$0xf] }
  0x3d   :  { %1297 = vmatpush.bf16.msrb.mxu0 %v2463_v2  ;;  %1310 = vmatpush.bf16.msrb.mxu1 %v2591_v6  ;;  %v2656_v62 = vld [vmem:[%s4460_s1 + $0x5b0] sm:$0xf0]  ;;  %v2925_v63 = vld [vmem:[%s4460_s1 + $0x284] sm:$0xf]  ;;  %v2531_v0 = vor.u32 %v2993_v54, %v2528_v55 }
  0x3e   :  { %v2957_v2 = vld [vmem:[%s4460_s1 + $0x384] sm:$0xf]  ;;  %v2384_v3 = vld [vmem:[%s4460_s1 + $0x390] sm:$0xf0]  ;;  %v2659_v6 = vor.u32 %v3025_v61, %v2656_v62  ;;  %v2054_v61 = vld [vmem:[%s4460_s1 + $0xe8] sm:$0xf] }
  0x3f   :  { %1348 = vmatpush.bf16.msra.mxu2 %v2099_v1  ;;  %1336 = vmatpush.bf16.msrb.mxu3 %v1955_v7  ;;  %v2256_v1 = vld [vmem:[%s4460_s1 + $0x290] sm:$0xf0]  ;;  %v2989_v4 = vld [vmem:[%s4460_s1 + $0x484] sm:$0xf]  ;;  %v2387_v8 = vor.u32 %v2957_v2, %v2384_v3  ;;  %v2876_v62 = vld [vmem:[%s4460_s1 + $0xf4] sm:$0xf0] }
  0x40   :  { %v2512_v5 = vld [vmem:[%s4460_s1 + $0x490] sm:$0xf0]  ;;  %v2259_v7 = vor.u32 %v2925_v63, %v2256_v1  ;;  %v3021_v10 = vld [vmem:[%s4460_s1 + $0x584] sm:$0xf]  ;;  %v2310_v2 = vld [vmem:[%s4460_s1 + $0x2e8] sm:$0xf] }
  0x41   :  { %1298 = vmatpush.bf16.msrb.mxu0 %v2447_v20  ;;  %1311 = vmatpush.bf16.msrb.mxu1 %v2575_v24  ;;  %v2640_v11 = vld [vmem:[%s4460_s1 + $0x590] sm:$0xf0]  ;;  %v2921_v12 = vld [vmem:[%s4460_s1 + $0x264] sm:$0xf]  ;;  %v2515_v13 = vor.u32 %v2989_v4, %v2512_v5  ;;  %v2940_v3 = vld [vmem:[%s4460_s1 + $0x2f4] sm:$0xf0] }
  0x42   :  { %v2240_v14 = vld [vmem:[%s4460_s1 + $0x270] sm:$0xf0]  ;;  %v2953_v15 = vld [vmem:[%s4460_s1 + $0x364] sm:$0xf] }
  0x43   :  { %1349 = vmatpush.bf16.msra.mxu2 %v2083_v19  ;;  %1337 = vmatpush.bf16.msrb.mxu3 %v1939_v25  ;;  %v2368_v16 = vld [vmem:[%s4460_s1 + $0x370] sm:$0xf0]  ;;  %v2985_v17 = vld [vmem:[%s4460_s1 + $0x464] sm:$0xf]  ;;  %v2643_v19 = vor.u32 %v3021_v10, %v2640_v11  ;;  %v2243_v20 = vor.u32 %v2921_v12, %v2240_v14  ;;  %v2055_v10 = vor.u32 %v2876_v62, %v2054_v61  ;;  %v2438_v11 = vld [vmem:[%s4460_s1 + $0x3e8] sm:$0xf] }
  0x44   :  { %1299 = vmatmul.bf16.vlgmr.msrb.gmra.mxu0 %v3548_v34  ;;  %1312 = vmatmul.bf16.vlgmr.msrb.gmra.mxu1 %v3559_v39  ;;  %v2496_v18 = vld [vmem:[%s4460_s1 + $0x470] sm:$0xf0]  ;;  %v2371_v21 = vor.u32 %v2953_v15, %v2368_v16  ;;  %v3017_v22 = vld [vmem:[%s4460_s1 + $0x564] sm:$0xf]  ;;  %v2972_v12 = vld [vmem:[%s4460_s1 + $0x3f4] sm:$0xf0]  ;;  %v2311_v16 = vor.u32 %v2940_v3, %v2310_v2 }
  0x45   :  { %1356 = vmatpush.bf16.msra.mxu0 %v2307_v28  ;;  %1369 = vmatpush.bf16.msra.mxu1 %v2435_v29  ;;  %v2624_v23 = vld [vmem:[%s4460_s1 + $0x570] sm:$0xf0]  ;;  %v2917_v24 = vld [vmem:[%s4460_s1 + $0x244] sm:$0xf]  ;;  %v2499_v25 = vor.u32 %v2985_v17, %v2496_v18  ;;  %v2182_v14 = vld [vmem:[%s4460_s1 + $0x1e8] sm:$0xf] }
  0x46   :  { %1338 = vmatmul.bf16.vlgmr.msrb.gmra.mxu3 %v3351_v57  ;;  %v2224_v26 = vld [vmem:[%s4460_s1 + $0x250] sm:$0xf0]  ;;  %v2949_v27 = vld [vmem:[%s4460_s1 + $0x344] sm:$0xf]  ;;  %v2627_v31 = vor.u32 %v3017_v22, %v2624_v23  ;;  %v2908_v15 = vld [vmem:[%s4460_s1 + $0x1f4] sm:$0xf0] }
  0x47   :  { %1382 = vmatpush.bf16.msra.mxu3 %v2563_v33  ;;  %1350 = vmatpush.bf16.msra.mxu2 %v2067_v38  ;;  %v2352_v28 = vld [vmem:[%s4460_s1 + $0x350] sm:$0xf0]  ;;  %v2981_v29 = vld [vmem:[%s4460_s1 + $0x444] sm:$0xf]  ;;  %v2227_v32 = vor.u32 %v2917_v24, %v2224_v26  ;;  %v2038_v18 = vld [vmem:[%s4460_s1 + $0xc8] sm:$0xf]  ;;  %v2183_v23 = vor.u32 %v2908_v15, %v2182_v14 }
  0x48   :  { %v2480_v30 = vld [vmem:[%s4460_s1 + $0x450] sm:$0xf0]  ;;  %v2355_v33 = vor.u32 %v2949_v27, %v2352_v28  ;;  %v3013_v35 = vld [vmem:[%s4460_s1 + $0x544] sm:$0xf]  ;;  %v2936_v22 = vld [vmem:[%s4460_s1 + $0x2d4] sm:$0xf0] }
  0x49   :  { %1357 = vmatpush.bf16.msra.mxu0 %v2291_v43  ;;  %1370 = vmatpush.bf16.msra.mxu1 %v2419_v44  ;;  %v2608_v36 = vld [vmem:[%s4460_s1 + $0x550] sm:$0xf0]  ;;  %v2913_v37 = vld [vmem:[%s4460_s1 + $0x224] sm:$0xf]  ;;  %v2483_v38 = vor.u32 %v2981_v29, %v2480_v30  ;;  %v2422_v24 = vld [vmem:[%s4460_s1 + $0x3c8] sm:$0xf] }
  0x4a   :  { %1351 = vmatmul.bf16.vlgmr.msra.gmra.mxu2 %v3381_v9  ;;  %v2208_v40 = vld [vmem:[%s4460_s1 + $0x230] sm:$0xf0]  ;;  %v2945_v41 = vld [vmem:[%s4460_s1 + $0x324] sm:$0xf]  ;;  %v2611_v45 = vor.u32 %v3013_v35, %v2608_v36  ;;  %v2166_v27 = vld [vmem:[%s4460_s1 + $0x1c8] sm:$0xf] }
  0x4b   :  { %1395 = vmatpush.bf16.msrb.mxu2 %v2691_v42  ;;  %1383 = vmatpush.bf16.msra.mxu3 %v2547_v49  ;;  %v2336_v42 = vld [vmem:[%s4460_s1 + $0x330] sm:$0xf0]  ;;  %v2977_v43 = vld [vmem:[%s4460_s1 + $0x424] sm:$0xf]  ;;  %v2211_v49 = vor.u32 %v2913_v37, %v2208_v40  ;;  %v2904_v28 = vld [vmem:[%s4460_s1 + $0x1d4] sm:$0xf0] }
  0x4c   :  { %v2464_v44 = vld [vmem:[%s4460_s1 + $0x430] sm:$0xf0]  ;;  %v3009_v46 = vld [vmem:[%s4460_s1 + $0x524] sm:$0xf]  ;;  %v2339_v50 = vor.u32 %v2945_v41, %v2336_v42  ;;  %v2022_v30 = vld [vmem:[%s4460_s1 + $0xa8] sm:$0xf]  ;;  %v2167_v36 = vor.u32 %v2904_v28, %v2166_v27 }
  0x4d   :  { %1358 = vmatpush.bf16.msra.mxu0 %v2275_v58  ;;  %1371 = vmatpush.bf16.msra.mxu1 %v2403_v59  ;;  %v2592_v47 = vld [vmem:[%s4460_s1 + $0x530] sm:$0xf0]  ;;  %v2909_v51 = vld [vmem:[%s4460_s1 + $0x204] sm:$0xf]  ;;  %v2467_v55 = vor.u32 %v2977_v43, %v2464_v44  ;;  %v2932_v35 = vld [vmem:[%s4460_s1 + $0x2b4] sm:$0xf0] }
  0x4e   :  { %v2192_v52 = vld [vmem:[%s4460_s1 + $0x210] sm:$0xf0]  ;;  %v2941_v54 = vld [vmem:[%s4460_s1 + $0x304] sm:$0xf]  ;;  %v2406_v37 = vld [vmem:[%s4460_s1 + $0x3a8] sm:$0xf] }
  0x4f   :  { %1396 = vmatpush.bf16.msrb.mxu2 %v2675_v56  ;;  %1384 = vmatpush.bf16.msra.mxu3 %v2531_v0  ;;  %v2320_v56 = vld [vmem:[%s4460_s1 + $0x310] sm:$0xf0]  ;;  %v2973_v58 = vld [vmem:[%s4460_s1 + $0x404] sm:$0xf]  ;;  %v2595_v0 = vor.u32 %v3009_v46, %v2592_v47  ;;  %v2195_v4 = vor.u32 %v2909_v51, %v2192_v52  ;;  %v2150_v41 = vld [vmem:[%s4460_s1 + $0x1a8] sm:$0xf] }
  0x50   :  { %v2448_v59 = vld [vmem:[%s4460_s1 + $0x410] sm:$0xf0]  ;;  %v3037_v63 = vld [vmem:[%s4460_s1 + $0x604] sm:$0xf]  ;;  %v2323_v5 = vor.u32 %v2941_v54, %v2320_v56  ;;  %v2900_v42 = vld [vmem:[%s4460_s1 + $0x1b4] sm:$0xf0] }
  0x51   :  { %1359 = vmatpush.bf16.msra.mxu0 %v2259_v7  ;;  %1372 = vmatpush.bf16.msra.mxu1 %v2387_v8  ;;  %v2704_v1 = vld [vmem:[%s4460_s1 + $0x610] sm:$0xf0]  ;;  %v2451_v8 = vor.u32 %v2973_v58, %v2448_v59  ;;  %v2006_v44 = vld [vmem:[%s4460_s1 + $0x88] sm:$0xf]  ;;  %v2960_v52 = vld [vmem:[%s4460_s1 + $0x394] sm:$0xf0] }
  0x52   :  { %v2576_v7 = vld [vmem:[%s4460_s1 + $0x510] sm:$0xf0]  ;;  %v2262_v47 = vld [vmem:[%s4460_s1 + $0x288] sm:$0xf]  ;;  %v2896_v56 = vld [vmem:[%s4460_s1 + $0x194] sm:$0xf0] }
  0x53   :  { %1397 = vmatpush.bf16.msrb.mxu2 %v2659_v6  ;;  %1385 = vmatpush.bf16.msra.mxu3 %v2515_v13  ;;  %v3005_v6 = vld [vmem:[%s4460_s1 + $0x504] sm:$0xf]  ;;  %v2707_v13 = vor.u32 %v3037_v63, %v2704_v1  ;;  %v2390_v51 = vld [vmem:[%s4460_s1 + $0x388] sm:$0xf]  ;;  %v2860_v61 = vld [vmem:[%s4460_s1 + $0x74] sm:$0xf0] }
  0x54   :  { %v2579_v17 = vor.u32 %v3005_v6, %v2576_v7  ;;  %v1990_v59 = vld [vmem:[%s4460_s1 + $0x68] sm:$0xf]  ;;  %v2391_v62 = vor.u32 %v2960_v52, %v2390_v51  ;;  %v2956_v3 = vld [vmem:[%s4460_s1 + $0x374] sm:$0xf0]  ;;  %v2874_v51 = vld [vmem:[%s4460_s1 + $0xec] sm:$0xf] }
  0x55   :  { %1360 = vmatpush.bf16.msra.mxu0 %v2243_v20  ;;  %1373 = vmatpush.bf16.msra.mxu1 %v2371_v21  ;;  %v2439_v20 = vor.u32 %v2972_v12, %v2438_v11  ;;  %v2294_v21 = vld [vmem:[%s4460_s1 + $0x2c8] sm:$0xf]  ;;  %v2892_v6 = vld [vmem:[%s4460_s1 + $0x174] sm:$0xf0]  ;;  %v2056_v52 = vld [vmem:[%s4460_s1 + $0xf8] sm:$0xf0] }
  0x56   :  { %v2295_v29 = vor.u32 %v2936_v22, %v2294_v21  ;;  %v2246_v63 = vld [vmem:[%s4460_s1 + $0x268] sm:$0xf]  ;;  %v2852_v22 = vld [vmem:[%s4460_s1 + $0x34] sm:$0xf0] }
  0x57   :  { %1398 = vmatpush.bf16.msrb.mxu2 %v2643_v19  ;;  %1386 = vmatpush.bf16.msra.mxu3 %v2499_v25  ;;  %v2872_v19 = vld [vmem:[%s4460_s1 + $0xd4] sm:$0xf0]  ;;  %v2374_v2 = vld [vmem:[%s4460_s1 + $0x368] sm:$0xf] }
  0x58   :  { %v2968_v25 = vld [vmem:[%s4460_s1 + $0x3d4] sm:$0xf0]  ;;  %v2039_v26 = vor.u32 %v2872_v19, %v2038_v18  ;;  %v2375_v11 = vor.u32 %v2956_v3, %v2374_v2  ;;  %v2230_v12 = vld [vmem:[%s4460_s1 + $0x248] sm:$0xf]  ;;  %v2059_v3 = vor.u32 %v2874_v51, %v2056_v52 }
  0x59   :  { %1361 = vmatpush.bf16.msra.mxu0 %v2227_v32  ;;  %1374 = vmatpush.bf16.msra.mxu1 %v2355_v33  ;;  %v2423_v32 = vor.u32 %v2968_v25, %v2422_v24  ;;  %v2278_v33 = vld [vmem:[%s4460_s1 + $0x2a8] sm:$0xf]  ;;  %v2888_v19 = vld [vmem:[%s4460_s1 + $0x154] sm:$0xf0] }
  0x5a   :  { %v2279_v43 = vor.u32 %v2932_v35, %v2278_v33  ;;  %v2358_v15 = vld [vmem:[%s4460_s1 + $0x348] sm:$0xf]  ;;  %v2916_v25 = vld [vmem:[%s4460_s1 + $0x234] sm:$0xf0] }
  0x5b   :  { %1399 = vmatpush.bf16.msrb.mxu2 %v2627_v31  ;;  %1387 = vmatpush.bf16.msra.mxu3 %v2483_v38  ;;  %v2868_v31 = vld [vmem:[%s4460_s1 + $0xb4] sm:$0xf0]  ;;  %v2102_v18 = vld [vmem:[%s4460_s1 + $0x148] sm:$0xf] }
  0x5c   :  { %v2964_v38 = vld [vmem:[%s4460_s1 + $0x3b4] sm:$0xf0]  ;;  %v2023_v40 = vor.u32 %v2868_v31, %v2022_v30  ;;  %v1958_v21 = vld [vmem:[%s4460_s1 + $0x28] sm:$0xf] }
  0x5d   :  { %1362 = vmatpush.bf16.msra.mxu0 %v2211_v49  ;;  %1375 = vmatpush.bf16.msra.mxu1 %v2339_v50  ;;  %v2407_v46 = vor.u32 %v2964_v38, %v2406_v37  ;;  %v2928_v49 = vld [vmem:[%s4460_s1 + $0x294] sm:$0xf0]  ;;  %v2151_v50 = vor.u32 %v2900_v42, %v2150_v41  ;;  %v2214_v24 = vld [vmem:[%s4460_s1 + $0x228] sm:$0xf] }
  0x5e   :  { %v2263_v58 = vor.u32 %v2928_v49, %v2262_v47  ;;  %v2342_v27 = vld [vmem:[%s4460_s1 + $0x328] sm:$0xf]  ;;  %v2948_v28 = vld [vmem:[%s4460_s1 + $0x334] sm:$0xf0]  ;;  %v2215_v33 = vor.u32 %v2916_v25, %v2214_v24 }
  0x5f   :  { %1400 = vmatpush.bf16.msrb.mxu2 %v2611_v45  ;;  %1388 = vmatpush.bf16.msra.mxu3 %v2467_v55  ;;  %v2864_v45 = vld [vmem:[%s4460_s1 + $0x94] sm:$0xf0]  ;;  %v2134_v55 = vld [vmem:[%s4460_s1 + $0x188] sm:$0xf]  ;;  %v2343_v38 = vor.u32 %v2948_v28, %v2342_v27  ;;  %v2152_v27 = vld [vmem:[%s4460_s1 + $0x1b8] sm:$0xf0] }
  0x60   :  { %v2007_v54 = vor.u32 %v2864_v45, %v2006_v44  ;;  %v2135_v1 = vor.u32 %v2896_v56, %v2134_v55  ;;  %v2086_v30 = vld [vmem:[%s4460_s1 + $0x128] sm:$0xf]  ;;  %v2884_v31 = vld [vmem:[%s4460_s1 + $0x134] sm:$0xf0] }
  0x61   :  { %1363 = vmatpush.bf16.msra.mxu0 %v2195_v4  ;;  %1376 = vmatpush.bf16.msra.mxu1 %v2323_v5  ;;  %v1991_v4 = vor.u32 %v2860_v61, %v1990_v59  ;;  %v2118_v5 = vld [vmem:[%s4460_s1 + $0x168] sm:$0xf]  ;;  %v2848_v35 = vld [vmem:[%s4460_s1 + $0x14] sm:$0xf0]  ;;  %v2087_v44 = vor.u32 %v2884_v31, %v2086_v30  ;;  %v2862_v30 = vld [vmem:[%s4460_s1 + $0x8c] sm:$0xf] }
  0x62   :  { %v2119_v14 = vor.u32 %v2892_v6, %v2118_v5  ;;  %v3004_v37 = vld [vmem:[%s4460_s1 + $0x4f4] sm:$0xf0]  ;;  %v2198_v41 = vld [vmem:[%s4460_s1 + $0x208] sm:$0xf]  ;;  %v2870_v5 = vld [vmem:[%s4460_s1 + $0xcc] sm:$0xf] }
  0x63   :  { %1401 = vmatpush.bf16.msrb.mxu2 %v2595_v0  ;;  %1389 = vmatpush.bf16.msra.mxu3 %v2451_v8  ;;  %v2924_v0 = vld [vmem:[%s4460_s1 + $0x274] sm:$0xf0]  ;;  %v1974_v8 = vld [vmem:[%s4460_s1 + $0x48] sm:$0xf]  ;;  %v2040_v6 = vld [vmem:[%s4460_s1 + $0xd8] sm:$0xf0] }
  0x64   :  { %1364 = vmatmul.bf16.vlgmr.msra.gmra.mxu0 %v3340_v53  ;;  %1377 = vmatmul.bf16.vlgmr.msra.gmra.mxu1 %v3353_v60  ;;  %v2247_v7 = vor.u32 %v2924_v0, %v2246_v63  ;;  %v2912_v42 = vld [vmem:[%s4460_s1 + $0x214] sm:$0xf0]  ;;  %v2694_v56 = vld [vmem:[%s4460_s1 + $0x5e8] sm:$0xf]  ;;  %v2906_v0 = vld [vmem:[%s4460_s1 + $0x1ec] sm:$0xf] }
  0x65   :  { %1421 = vmatpush.bf16.msrb.mxu1 %v2055_v10  ;;  %1447 = vmatpush.bf16.msrb.mxu0 %v2311_v16  ;;  %v2856_v10 = vld [vmem:[%s4460_s1 + $0x54] sm:$0xf0]  ;;  %v2199_v55 = vor.u32 %v2912_v42, %v2198_v41  ;;  %v2550_v59 = vld [vmem:[%s4460_s1 + $0x4c8] sm:$0xf]  ;;  %v2008_v31 = vld [vmem:[%s4460_s1 + $0x98] sm:$0xf0] }
  0x66   :  { %1390 = vmatmul.bf16.vlgmr.msra.gmra.mxu3 %v3548_v34  ;;  %v2952_v16 = vld [vmem:[%s4460_s1 + $0x354] sm:$0xf0]  ;;  %v2518_v24 = vld [vmem:[%s4460_s1 + $0x488] sm:$0xf]  ;;  %v2136_v41 = vld [vmem:[%s4460_s1 + $0x198] sm:$0xf0]  ;;  %v2011_v42 = vor.u32 %v2862_v30, %v2008_v31 }
  0x67   :  { %1415 = vmatpush.bf16.msrb.mxu3 %v2707_v13  ;;  %1402 = vmatpush.bf16.msrb.mxu2 %v2579_v17  ;;  %v2920_v13 = vld [vmem:[%s4460_s1 + $0x254] sm:$0xf0]  ;;  %v1975_v17 = vor.u32 %v2856_v10, %v1974_v8  ;;  %v2678_v10 = vld [vmem:[%s4460_s1 + $0x5c8] sm:$0xf]  ;;  %v2440_v30 = vld [vmem:[%s4460_s1 + $0x3f8] sm:$0xf0] }
  0x68   :  { %v2944_v45 = vld [vmem:[%s4460_s1 + $0x314] sm:$0xf0]  ;;  %v2486_v51 = vld [vmem:[%s4460_s1 + $0x448] sm:$0xf] }
  0x69   :  { %1422 = vmatpush.bf16.msrb.mxu1 %v2039_v26  ;;  %1448 = vmatpush.bf16.msrb.mxu0 %v2295_v29  ;;  %v2103_v26 = vor.u32 %v2888_v19, %v2102_v18  ;;  %v1959_v29 = vor.u32 %v2852_v22, %v1958_v21  ;;  %v3040_v47 = vld [vmem:[%s4460_s1 + $0x614] sm:$0xf0]  ;;  %v2866_v18 = vld [vmem:[%s4460_s1 + $0xac] sm:$0xf]  ;;  %v2024_v19 = vld [vmem:[%s4460_s1 + $0xb8] sm:$0xf0] }
  0x6a   :  { %1403 = vmatmul.bf16.vlgmr.msrb.gmra.mxu2 %v3559_v39  ;;  %v2662_v22 = vld [vmem:[%s4460_s1 + $0x5a8] sm:$0xf]  ;;  %v2992_v25 = vld [vmem:[%s4460_s1 + $0x494] sm:$0xf0]  ;;  %v2027_v28 = vor.u32 %v2866_v18, %v2024_v19  ;;  %v2088_v18 = vld [vmem:[%s4460_s1 + $0x138] sm:$0xf0] }
  0x6b   :  { %1460 = vmatpush.bf16.msra.mxu2 %v2439_v20  ;;  %1434 = vmatpush.bf16.msra.mxu3 %v2183_v23  ;;  %v2231_v20 = vor.u32 %v2920_v13, %v2230_v12  ;;  %v2359_v23 = vor.u32 %v2952_v16, %v2358_v15  ;;  %v2534_v12 = vld [vmem:[%s4460_s1 + $0x4a8] sm:$0xf]  ;;  %v2996_v13 = vld [vmem:[%s4460_s1 + $0x4b4] sm:$0xf0]  ;;  %v2168_v15 = vld [vmem:[%s4460_s1 + $0x1d8] sm:$0xf0]  ;;  %v2043_v16 = vor.u32 %v2870_v5, %v2040_v6 }
  0x6c   :  { %v2984_v52 = vld [vmem:[%s4460_s1 + $0x454] sm:$0xf0]  ;;  %v2104_v5 = vld [vmem:[%s4460_s1 + $0x158] sm:$0xf0] }
  0x6d   :  { %1423 = vmatpush.bf16.msrb.mxu1 %v2023_v40  ;;  %1449 = vmatpush.bf16.msrb.mxu0 %v2279_v43  ;;  %v2070_v40 = vld [vmem:[%s4460_s1 + $0x108] sm:$0xf] }
  0x6e   :  { %v2326_v43 = vld [vmem:[%s4460_s1 + $0x308] sm:$0xf] }
  0x6f   :  { %1461 = vmatpush.bf16.msra.mxu2 %v2423_v32  ;;  %1435 = vmatpush.bf16.msra.mxu3 %v2167_v36  ;;  %v1942_v32 = vld [vmem:[%s4460_s1 + $0x8] sm:$0xf]  ;;  %v2327_v61 = vor.u32 %v2944_v45, %v2326_v43  ;;  %v1992_v45 = vld [vmem:[%s4460_s1 + $0x78] sm:$0xf0] }
  0x70   :  { %v2566_v36 = vld [vmem:[%s4460_s1 + $0x4e8] sm:$0xf]  ;;  %v1943_v49 = vor.u32 %v2848_v35, %v1942_v32  ;;  %v2519_v32 = vor.u32 %v2992_v25, %v2518_v24  ;;  %v2846_v24 = vld [vmem:[%s4460_s1 + $0xc] sm:$0xf]  ;;  %v1944_v25 = vld [vmem:[%s4460_s1 + $0x18] sm:$0xf0] }
  0x71   :  { %1424 = vmatpush.bf16.msrb.mxu1 %v2007_v54  ;;  %1450 = vmatpush.bf16.msrb.mxu0 %v2263_v58  ;;  %v2567_v54 = vor.u32 %v3004_v37, %v2566_v36  ;;  %v3036_v58 = vld [vmem:[%s4460_s1 + $0x5f4] sm:$0xf0]  ;;  %v2646_v35 = vld [vmem:[%s4460_s1 + $0x588] sm:$0xf] }
  0x72   :  { %v3024_v36 = vld [vmem:[%s4460_s1 + $0x594] sm:$0xf0]  ;;  %v2502_v37 = vld [vmem:[%s4460_s1 + $0x468] sm:$0xf] }
  0x73   :  { %1462 = vmatpush.bf16.msra.mxu2 %v2407_v46  ;;  %1436 = vmatpush.bf16.msra.mxu3 %v2151_v50  ;;  %v2710_v46 = vld [vmem:[%s4460_s1 + $0x608] sm:$0xf]  ;;  %v2880_v50 = vld [vmem:[%s4460_s1 + $0x114] sm:$0xf0]  ;;  %v2647_v43 = vor.u32 %v3024_v36, %v2646_v35  ;;  %v2934_v35 = vld [vmem:[%s4460_s1 + $0x2cc] sm:$0xf]  ;;  %v1947_v36 = vor.u32 %v2846_v24, %v1944_v25 }
  0x74   :  { %v2711_v63 = vor.u32 %v3040_v47, %v2710_v46  ;;  %v2071_v2 = vor.u32 %v2880_v50, %v2070_v40  ;;  %v2894_v40 = vld [vmem:[%s4460_s1 + $0x18c] sm:$0xf]  ;;  %v3020_v50 = vld [vmem:[%s4460_s1 + $0x574] sm:$0xf0]  ;;  %v2376_v25 = vld [vmem:[%s4460_s1 + $0x378] sm:$0xf0] }
  0x75   :  { %1425 = vmatpush.bf16.msrb.mxu1 %v1991_v4  ;;  %1451 = vmatpush.bf16.msrb.mxu0 %v2247_v7  ;;  %v2695_v4 = vor.u32 %v3036_v58, %v2694_v56  ;;  %v2139_v47 = vor.u32 %v2894_v40, %v2136_v41  ;;  %v2072_v40 = vld [vmem:[%s4460_s1 + $0x118] sm:$0xf0] }
  0x76   :  { %2717 = vmatmul.msk.bf16.vlgmr.msrb.gmra.mxu3 %vm1235_vm0, %v3460_v48 }
  0x77   :  { %1463 = vmatpush.bf16.msra.mxu2 %v2391_v62  ;;  %1437 = vmatpush.bf16.msra.mxu3 %v2135_v1  ;;  %v3000_v62 = vld [vmem:[%s4460_s1 + $0x4d4] sm:$0xf0]  ;;  %v2184_v1 = vld [vmem:[%s4460_s1 + $0x1f8] sm:$0xf0] }
  0x78   :  { %v2551_v7 = vor.u32 %v3000_v62, %v2550_v59  ;;  %v2187_v8 = vor.u32 %v2906_v0, %v2184_v1  ;;  %v2854_v59 = vld [vmem:[%s4460_s1 + $0x4c] sm:$0xf]  ;;  %v2487_v62 = vor.u32 %v2984_v52, %v2486_v51  ;;  %v2614_v0 = vld [vmem:[%s4460_s1 + $0x548] sm:$0xf]  ;;  %v3016_v1 = vld [vmem:[%s4460_s1 + $0x554] sm:$0xf0] }
  0x79   :  { %1426 = vmatpush.bf16.msrb.mxu1 %v1975_v17  ;;  %1452 = vmatpush.bf16.msrb.mxu0 %v2231_v20  ;;  %v2535_v20 = vor.u32 %v2996_v13, %v2534_v12  ;;  %v2598_v13 = vld [vmem:[%s4460_s1 + $0x528] sm:$0xf]  ;;  %v2998_v51 = vld [vmem:[%s4460_s1 + $0x4cc] sm:$0xf]  ;;  %v2552_v52 = vld [vmem:[%s4460_s1 + $0x4d8] sm:$0xf0] }
  0x7b   :  { %1464 = vmatpush.bf16.msra.mxu2 %v2375_v11  ;;  %1438 = vmatpush.bf16.msra.mxu3 %v2119_v14  ;;  %v3032_v11 = vld [vmem:[%s4460_s1 + $0x5d4] sm:$0xf0]  ;;  %v2902_v14 = vld [vmem:[%s4460_s1 + $0x1cc] sm:$0xf] }
  0x7c   :  { %v2679_v17 = vor.u32 %v3032_v11, %v2678_v10  ;;  %v2171_v21 = vor.u32 %v2902_v14, %v2168_v15  ;;  %v1960_v10 = vld [vmem:[%s4460_s1 + $0x38] sm:$0xf0]  ;;  %v3012_v14 = vld [vmem:[%s4460_s1 + $0x534] sm:$0xf0]  ;;  %v2454_v15 = vld [vmem:[%s4460_s1 + $0x408] sm:$0xf] }
  0x7d   :  { %1427 = vmatpush.bf16.msrb.mxu1 %v1959_v29  ;;  %1453 = vmatpush.bf16.msrb.mxu0 %v2215_v33 }
  0x7f   :  { %1465 = vmatpush.bf16.msra.mxu2 %v2359_v23  ;;  %1439 = vmatpush.bf16.msra.mxu3 %v2103_v26  ;;  %v3028_v23 = vld [vmem:[%s4460_s1 + $0x5b4] sm:$0xf0]  ;;  %v2898_v26 = vld [vmem:[%s4460_s1 + $0x1ac] sm:$0xf] }
  0x80   :  { %v2663_v29 = vor.u32 %v3028_v23, %v2662_v22  ;;  %v2155_v33 = vor.u32 %v2898_v26, %v2152_v27  ;;  %v2599_v22 = vor.u32 %v3012_v14, %v2598_v13  ;;  %v2582_v23 = vld [vmem:[%s4460_s1 + $0x508] sm:$0xf]  ;;  %v2990_v14 = vld [vmem:[%s4460_s1 + $0x48c] sm:$0xf] }
  0x81   :  { %1428 = vmatpush.bf16.msrb.mxu1 %v1943_v49  ;;  %1454 = vmatpush.bf16.msrb.mxu0 %v2199_v55  ;;  %v2630_v49 = vld [vmem:[%s4460_s1 + $0x568] sm:$0xf]  ;;  %v2120_v55 = vld [vmem:[%s4460_s1 + $0x178] sm:$0xf0] }
  0x82   :  { %v2631_v58 = vor.u32 %v3020_v50, %v2630_v49  ;;  %v2424_v50 = vld [vmem:[%s4460_s1 + $0x3d8] sm:$0xf0] }
  0x83   :  { %1466 = vmatpush.bf16.msra.mxu2 %v2343_v38  ;;  %1440 = vmatpush.bf16.msra.mxu3 %v2087_v44  ;;  %v2988_v38 = vld [vmem:[%s4460_s1 + $0x474] sm:$0xf0]  ;;  %v2858_v44 = vld [vmem:[%s4460_s1 + $0x6c] sm:$0xf] }
  0x84   :  { %1455 = vmatmul.bf16.vlgmr.msrb.gmra.mxu0 %v3340_v53  ;;  %1429 = vmatmul.bf16.vlgmr.msrb.gmra.mxu1 %v3351_v57  ;;  %v2503_v46 = vor.u32 %v2988_v38, %v2502_v37  ;;  %v1995_v56 = vor.u32 %v2858_v44, %v1992_v45  ;;  %v2296_v37 = vld [vmem:[%s4460_s1 + $0x2d8] sm:$0xf0]  ;;  %v2878_v38 = vld [vmem:[%s4460_s1 + $0x10c] sm:$0xf] }
  0x85   :  { %1473 = vmatpush.bf16.msra.mxu1 %v2567_v54  ;;  %1506 = vmatpush.bf16.msra.mxu0 %v2711_v63  ;;  %v2890_v54 = vld [vmem:[%s4460_s1 + $0x16c] sm:$0xf]  ;;  %v2075_v49 = vor.u32 %v2878_v38, %v2072_v40 }
  0x86   :  { %v2123_v63 = vor.u32 %v2890_v54, %v2120_v55  ;;  %v2930_v55 = vld [vmem:[%s4460_s1 + $0x2ac] sm:$0xf] }
  0x87   :  { %1467 = vmatpush.bf16.msra.mxu2 %v2327_v61  ;;  %1441 = vmatpush.bf16.msra.mxu3 %v2071_v2  ;;  %v1976_v61 = vld [vmem:[%s4460_s1 + $0x58] sm:$0xf0]  ;;  %v2470_v2 = vld [vmem:[%s4460_s1 + $0x428] sm:$0xf]  ;;  %v2950_v38 = vld [vmem:[%s4460_s1 + $0x34c] sm:$0xf] }
  0x88   :  { %v1979_v6 = vor.u32 %v2854_v59, %v1976_v61  ;;  %v2680_v59 = vld [vmem:[%s4460_s1 + $0x5d8] sm:$0xf0] }
  0x89   :  { %1474 = vmatpush.bf16.msra.mxu1 %v2551_v7  ;;  %1525 = vmatpush.bf16.msrb.mxu0 %v2187_v8  ;;  %v2615_v7 = vor.u32 %v3016_v1, %v2614_v0  ;;  %v2850_v8 = vld [vmem:[%s4460_s1 + $0x2c] sm:$0xf]  ;;  %v2408_v1 = vld [vmem:[%s4460_s1 + $0x3b8] sm:$0xf0] }
  0x8a   :  { %1442 = vmatmul.bf16.vlgmr.msra.gmra.mxu3 %v3381_v9  ;;  %1468 = vmatmul.bf16.vlgmr.msra.gmra.mxu2 %v3353_v60  ;;  %v1963_v19 = vor.u32 %v2850_v8, %v1960_v10  ;;  %v2664_v8 = vld [vmem:[%s4460_s1 + $0x5b8] sm:$0xf0] }
  0x8b   :  { %1512 = vmatpush.bf16.msrb.mxu2 %v2059_v3  ;;  %1486 = vmatpush.bf16.msrb.mxu3 %v2695_v4  ;;  %v2980_v3 = vld [vmem:[%s4460_s1 + $0x434] sm:$0xf0]  ;;  %v2886_v4 = vld [vmem:[%s4460_s1 + $0x14c] sm:$0xf] }
  0x8c   :  { %v2471_v11 = vor.u32 %v2980_v3, %v2470_v2  ;;  %v2107_v12 = vor.u32 %v2886_v4, %v2104_v5  ;;  %v2994_v2 = vld [vmem:[%s4460_s1 + $0x4ac] sm:$0xf]  ;;  %v2536_v3 = vld [vmem:[%s4460_s1 + $0x4b8] sm:$0xf0] }
  0x8d   :  { %1475 = vmatpush.bf16.msra.mxu1 %v2535_v20  ;;  %1526 = vmatpush.bf16.msrb.mxu0 %v2171_v21  ;;  %v2938_v20 = vld [vmem:[%s4460_s1 + $0x2ec] sm:$0xf]  ;;  %v2312_v21 = vld [vmem:[%s4460_s1 + $0x2f8] sm:$0xf0] }
  0x8e   :  { %v2315_v31 = vor.u32 %v2938_v20, %v2312_v21  ;;  %v2926_v5 = vld [vmem:[%s4460_s1 + $0x28c] sm:$0xf] }
  0x8f   :  { %1513 = vmatpush.bf16.msrb.mxu2 %v2043_v16  ;;  %1487 = vmatpush.bf16.msrb.mxu3 %v2679_v17  ;;  %v2976_v16 = vld [vmem:[%s4460_s1 + $0x414] sm:$0xf0]  ;;  %v2882_v17 = vld [vmem:[%s4460_s1 + $0x12c] sm:$0xf] }
  0x90   :  { %v2455_v26 = vor.u32 %v2976_v16, %v2454_v15  ;;  %v2091_v27 = vor.u32 %v2882_v17, %v2088_v18  ;;  %v2520_v15 = vld [vmem:[%s4460_s1 + $0x498] sm:$0xf0]  ;;  %v2922_v17 = vld [vmem:[%s4460_s1 + $0x26c] sm:$0xf] }
  0x91   :  { %1476 = vmatpush.bf16.msra.mxu1 %v2519_v32  ;;  %1527 = vmatpush.bf16.msrb.mxu0 %v2155_v33  ;;  %v3002_v32 = vld [vmem:[%s4460_s1 + $0x4ec] sm:$0xf]  ;;  %v2568_v33 = vld [vmem:[%s4460_s1 + $0x4f8] sm:$0xf0] }
  0x92   :  { %v2571_v45 = vor.u32 %v3002_v32, %v2568_v33  ;;  %v2248_v18 = vld [vmem:[%s4460_s1 + $0x278] sm:$0xf0]  ;;  %v3022_v20 = vld [vmem:[%s4460_s1 + $0x58c] sm:$0xf] }
  0x93   :  { %1514 = vmatpush.bf16.msrb.mxu2 %v2027_v28  ;;  %1488 = vmatpush.bf16.msrb.mxu3 %v2663_v29  ;;  %v3008_v28 = vld [vmem:[%s4460_s1 + $0x514] sm:$0xf0]  ;;  %v2970_v29 = vld [vmem:[%s4460_s1 + $0x3ec] sm:$0xf]  ;;  %v2251_v24 = vor.u32 %v2922_v17, %v2248_v18  ;;  %v2632_v33 = vld [vmem:[%s4460_s1 + $0x578] sm:$0xf0] }
  0x94   :  { %2718 = vmatmul.msk.bf16.vlgmr.msra.gmra.mxu0 %vm1235_vm0, %v3460_v48  ;;  %v2583_v41 = vor.u32 %v3008_v28, %v2582_v23  ;;  %v2443_v44 = vor.u32 %v2970_v29, %v2440_v30  ;;  %v2954_v23 = vld [vmem:[%s4460_s1 + $0x36c] sm:$0xf] }
  0x95   :  { %1477 = vmatpush.bf16.msra.mxu1 %v2503_v46  ;;  %1528 = vmatpush.bf16.msrb.mxu0 %v2139_v47  ;;  %v2966_v46 = vld [vmem:[%s4460_s1 + $0x3cc] sm:$0xf]  ;;  %v2299_v47 = vor.u32 %v2934_v35, %v2296_v37 }
  0x96   :  { %v2427_v61 = vor.u32 %v2966_v46, %v2424_v50  ;;  %v2918_v30 = vld [vmem:[%s4460_s1 + $0x24c] sm:$0xf] }
  0x97   :  { %1515 = vmatpush.bf16.msrb.mxu2 %v2011_v42  ;;  %1489 = vmatpush.bf16.msrb.mxu3 %v2647_v43  ;;  %v3034_v42 = vld [vmem:[%s4460_s1 + $0x5ec] sm:$0xf]  ;;  %v2696_v43 = vld [vmem:[%s4460_s1 + $0x5f8] sm:$0xf0] }
  0x98   :  { %v2699_v54 = vor.u32 %v3034_v42, %v2696_v43  ;;  %v3018_v32 = vld [vmem:[%s4460_s1 + $0x56c] sm:$0xf]  ;;  %v2360_v42 = vld [vmem:[%s4460_s1 + $0x358] sm:$0xf0] }
  0x99   :  { %1478 = vmatpush.bf16.msra.mxu1 %v2487_v62  ;;  %1529 = vmatpush.bf16.msrb.mxu0 %v2123_v63  ;;  %v2555_v62 = vor.u32 %v2998_v51, %v2552_v52  ;;  %v2962_v63 = vld [vmem:[%s4460_s1 + $0x3ac] sm:$0xf]  ;;  %v2616_v51 = vld [vmem:[%s4460_s1 + $0x558] sm:$0xf0]  ;;  %v2363_v52 = vor.u32 %v2950_v38, %v2360_v42 }
  0x9a   :  { %v2411_v10 = vor.u32 %v2962_v63, %v2408_v1  ;;  %v2982_v43 = vld [vmem:[%s4460_s1 + $0x44c] sm:$0xf] }
  0x9b   :  { %1516 = vmatpush.bf16.msrb.mxu2 %v1995_v56  ;;  %1490 = vmatpush.bf16.msrb.mxu3 %v2631_v58  ;;  %v2280_v56 = vld [vmem:[%s4460_s1 + $0x2b8] sm:$0xf0]  ;;  %v3030_v58 = vld [vmem:[%s4460_s1 + $0x5cc] sm:$0xf] }
  0x9c   :  { %v2283_v0 = vor.u32 %v2930_v55, %v2280_v56  ;;  %v2683_v4 = vor.u32 %v3030_v58, %v2680_v59  ;;  %v2914_v46 = vld [vmem:[%s4460_s1 + $0x22c] sm:$0xf]  ;;  %v2344_v58 = vld [vmem:[%s4460_s1 + $0x338] sm:$0xf0] }
  0x9d   :  { %1479 = vmatpush.bf16.msra.mxu1 %v2471_v11  ;;  %1530 = vmatpush.bf16.msrb.mxu0 %v2107_v12  ;;  %v2539_v11 = vor.u32 %v2994_v2, %v2536_v3  ;;  %v2958_v12 = vld [vmem:[%s4460_s1 + $0x38c] sm:$0xf]  ;;  %v2600_v3 = vld [vmem:[%s4460_s1 + $0x538] sm:$0xf0] }
  0x9e   :  { %v3014_v50 = vld [vmem:[%s4460_s1 + $0x54c] sm:$0xf] }
  0x9f   :  { %1517 = vmatpush.bf16.msrb.mxu2 %v1979_v6  ;;  %1491 = vmatpush.bf16.msrb.mxu3 %v2615_v7  ;;  %v2264_v6 = vld [vmem:[%s4460_s1 + $0x298] sm:$0xf0]  ;;  %v3026_v7 = vld [vmem:[%s4460_s1 + $0x5ac] sm:$0xf] }
  0xa0   :  { %v2267_v13 = vor.u32 %v2926_v5, %v2264_v6  ;;  %v2667_v16 = vor.u32 %v3026_v7, %v2664_v8  ;;  %v2946_v55 = vld [vmem:[%s4460_s1 + $0x32c] sm:$0xf]  ;;  %v2712_v5 = vld [vmem:[%s4460_s1 + $0x618] sm:$0xf0] }
  0xa1   :  { %1480 = vmatpush.bf16.msra.mxu1 %v2455_v26  ;;  %1531 = vmatpush.bf16.msrb.mxu0 %v2091_v27  ;;  %v2986_v26 = vld [vmem:[%s4460_s1 + $0x46c] sm:$0xf]  ;;  %v2504_v27 = vld [vmem:[%s4460_s1 + $0x478] sm:$0xf0]  ;;  %v2347_v7 = vor.u32 %v2946_v55, %v2344_v58 }
  0xa2   :  { %v2507_v37 = vor.u32 %v2986_v26, %v2504_v27  ;;  %v2978_v59 = vld [vmem:[%s4460_s1 + $0x42c] sm:$0xf]  ;;  %v3056_v27 = vld [vmem:[%s4463_s3 + $0x78] sm:$0xff] }
  0xa3   :  { %1518 = vmatpush.bf16.msrb.mxu2 %v1963_v19  ;;  %1492 = vmatpush.bf16.msrb.mxu3 %v2599_v22  ;;  %v2523_v22 = vor.u32 %v2990_v14, %v2520_v15  ;;  %v2910_v63 = vld [vmem:[%s4460_s1 + $0x20c] sm:$0xf] }
  0xa4   :  { %1481 = vmatmul.bf16.vlgmr.msra.gmra.mxu1 %v3548_v34  ;;  %v3010_v1 = vld [vmem:[%s4460_s1 + $0x52c] sm:$0xf] }
  0xa5   :  { %1538 = vmatpush.bf16.msrb.mxu1 %v2315_v31  ;;  %1532 = vmatpush.bf16.msrb.mxu0 %v2075_v49  ;;  %v4229_v19 = vpop.f32.mrf.mxu0  ;;  %v4249_v29 = vpop.f32.mrf.mxu1  ;;  %v2232_v31 = vld [vmem:[%s4460_s1 + $0x258] sm:$0xf0]  ;;  %v2603_v14 = vor.u32 %v3010_v1, %v2600_v3  ;;  %v2974_v15 = vld [vmem:[%s4460_s1 + $0x40c] sm:$0xf] }
  0xa6   :  { %v2235_v40 = vor.u32 %v2918_v30, %v2232_v31  ;;  %v3006_v18 = vld [vmem:[%s4460_s1 + $0x50c] sm:$0xf]  ;;  %v3055_v31 = vld [vmem:[%s4463_s3 + $0x70] sm:$0xff] }
  0xa7   :  { %1519 = vmatpush.bf16.msrb.mxu2 %v1947_v36  ;;  %1493 = vmatpush.bf16.msrb.mxu3 %v2583_v41  ;;  %v2379_v36 = vor.u32 %v2954_v23, %v2376_v25  ;;  %v3048_v23 = vld [vmem:[%s4463_s3 + $0x38] sm:$0xff] }
  0xa8   :  { %1533 = vmatmul.bf16.vlgmr.msrb.gmra.mxu0 %v3381_v9  ;;  %v2648_v9 = vld [vmem:[%s4460_s1 + $0x598] sm:$0xf0]  ;;  %v4263_v35 = vpop.f32.mrf.mxu2 }
  0xa9   :  { %1539 = vmatpush.bf16.msrb.mxu1 %v2299_v47  ;;  %1577 = vmatpush.bf16.msra.mxu0 %v2699_v54  ;;  %v2651_v28 = vor.u32 %v3022_v20, %v2648_v9  ;;  %v4268_v41 = vpop.f32.mrf.mxu3  ;;  %v2216_v47 = vld [vmem:[%s4460_s1 + $0x238] sm:$0xf0] }
  0xaa   :  { %1494 = vmatmul.bf16.vlgmr.msrb.gmra.mxu3 %v3559_v39  ;;  %1520 = vmatmul.bf16.vlgmr.msrb.gmra.mxu2 %v3351_v57  ;;  %v2392_v57 = vld [vmem:[%s4460_s1 + $0x398] sm:$0xf0]  ;;  %v2219_v56 = vor.u32 %v2914_v46, %v2216_v47  ;;  %v3042_v46 = vld [vmem:[%s4463_s3 + $0x8] sm:$0xff] }
  0xab   :  { %1551 = vmatpush.bf16.msra.mxu3 %v2443_v44  ;;  %1564 = vmatpush.bf16.msra.mxu2 %v2571_v45  ;;  %v2395_v21 = vor.u32 %v2958_v12, %v2392_v57  ;;  %v2488_v44 = vld [vmem:[%s4460_s1 + $0x458] sm:$0xf0]  ;;  %v2635_v45 = vor.u32 %v3018_v32, %v2632_v33  ;;  %v2942_v12 = vld [vmem:[%s4460_s1 + $0x30c] sm:$0xf] }
  0xac   :  { %v2491_v54 = vor.u32 %v2982_v43, %v2488_v44  ;;  %v2584_v20 = vld [vmem:[%s4460_s1 + $0x518] sm:$0xf0] }
  0xad   :  { %1540 = vmatpush.bf16.msrb.mxu1 %v2283_v0  ;;  %1578 = vmatpush.bf16.msra.mxu0 %v2683_v4  ;;  %v1250_v49 = vpop.f32.mrf.mxu0  ;;  %v2200_v0 = vld [vmem:[%s4460_s1 + $0x218] sm:$0xf0]  ;;  %v1263_v2 = vpop.f32.mrf.mxu1  ;;  %v3038_v4 = vld [vmem:[%s4460_s1 + $0x60c] sm:$0xf] }
  0xae   :  { %v2715_v17 = vor.u32 %v3038_v4, %v2712_v5  ;;  %v3064_v5 = vld [vmem:[%s4463_s3 + $0xb8] sm:$0xff] }
  0xaf   :  { %1552 = vmatpush.bf16.msra.mxu3 %v2427_v61  ;;  %1565 = vmatpush.bf16.msra.mxu2 %v2555_v62  ;;  %v2472_v61 = vld [vmem:[%s4460_s1 + $0x438] sm:$0xf0]  ;;  %v2619_v62 = vor.u32 %v3014_v50, %v2616_v51  ;;  %v3041_v50 = vld [vmem:[%s4463_s3] sm:$0xff] }
  0xb0   :  { %v1276_v6 = vpop.f32.mrf.mxu2  ;;  %v2475_v8 = vor.u32 %v2978_v59, %v2472_v61 }
  0xb1   :  { %1541 = vmatpush.bf16.msrb.mxu1 %v2267_v13  ;;  %1579 = vmatpush.bf16.msra.mxu0 %v2667_v16  ;;  %v2328_v13 = vld [vmem:[%s4460_s1 + $0x318] sm:$0xf0]  ;;  %v1289_v57 = vpop.f32.mrf.mxu3  ;;  %v3063_v6 = vld [vmem:[%s4463_s3 + $0xb0] sm:$0xff] }
  0xb2   :  { %v2456_v16 = vld [vmem:[%s4460_s1 + $0x418] sm:$0xf0] }
  0xb3   :  { %1553 = vmatpush.bf16.msra.mxu3 %v2411_v10  ;;  %1566 = vmatpush.bf16.msra.mxu2 %v2539_v11  ;;  %v4324_v10 = vld [vmem:[%s4462_s2] sm:$0xf]  ;;  %v2203_v11 = vor.u32 %v2910_v63, %v2200_v0 }
  0xb4   :  { %v223_v9 = vperm.slane %v4324_v10, 0  ;;  %v224_v59 = vperm.slane %v4324_v10, 1 }
  0xb5   :  { %1542 = vmatpush.bf16.msrb.mxu1 %v2251_v24  ;;  %1580 = vmatpush.bf16.msra.mxu0 %v2651_v28  ;;  %v2587_v24 = vor.u32 %v3006_v18, %v2584_v20  ;;  %v3047_v28 = vld [vmem:[%s4463_s3 + $0x30] sm:$0xff]  ;;  %v3060_v20 = vld [vmem:[%s4463_s3 + $0x98] sm:$0xff] }
  0xb6   :  { %v1249_v25 = vadd.f32 %v4229_v19, %v223_v9  ;;  %v3059_v9 = vld [vmem:[%s4463_s3 + $0x90] sm:$0xff] }
  0xb7   :  { %1554 = vmatpush.bf16.msra.mxu3 %v2395_v21  ;;  %1567 = vmatpush.bf16.msra.mxu2 %v2523_v22  ;;  %v2331_v21 = vor.u32 %v2942_v12, %v2328_v13  ;;  %v2459_v22 = vor.u32 %v2974_v15, %v2456_v16  ;;  %v3062_v13 = vld [vmem:[%s4463_s3 + $0xa8] sm:$0xff] }
  0xb8   :  { %v1262_v19 = vadd.f32 %v4249_v29, %v1249_v25 }
  0xb9   :  { %1543 = vmatpush.bf16.msrb.mxu1 %v2235_v40  ;;  %1581 = vmatpush.bf16.msra.mxu0 %v2635_v45  ;;  %v1326_v26 = vpop.f32.mrf.mxu2  ;;  %v3053_v40 = vld [vmem:[%s4463_s3 + $0x60] sm:$0xff]  ;;  %v3052_v45 = vld [vmem:[%s4463_s3 + $0x58] sm:$0xff] }
  0xba   :  { %v1275_v32 = vadd.f32 %v4263_v35, %v1262_v19  ;;  %v3057_v19 = vld [vmem:[%s4463_s3 + $0x80] sm:$0xff] }
  0xbb   :  { %1555 = vmatpush.bf16.msra.mxu3 %v2379_v36  ;;  %1568 = vmatpush.bf16.msra.mxu2 %v2507_v37  ;;  %v3044_v36 = vld [vmem:[%s4463_s3 + $0x18] sm:$0xff] }
  0xbc   :  { %v1288_v29 = vadd.f32 %v4268_v41, %v1275_v32  ;;  %v3043_v41 = vld [vmem:[%s4463_s3 + $0x10] sm:$0xff] }
  0xbd   :  { %1544 = vmatpush.bf16.msrb.mxu1 %v2219_v56  ;;  %1582 = vmatpush.bf16.msra.mxu0 %v2619_v62  ;;  %v3049_v56 = vld [vmem:[%s4463_s3 + $0x40] sm:$0xff] }
  0xbf   :  { %1556 = vmatpush.bf16.msra.mxu3 %v2363_v52  ;;  %1569 = vmatpush.bf16.msra.mxu2 %v2491_v54  ;;  %v3050_v54 = vld [vmem:[%s4463_s3 + $0x48] sm:$0xff] }
  0xc1   :  { %1545 = vmatpush.bf16.msrb.mxu1 %v2203_v11  ;;  %1583 = vmatpush.bf16.msra.mxu0 %v2603_v14  ;;  %v1300_v30 = vpop.f32.mrf.mxu0  ;;  %v1313_v33 = vpop.f32.mrf.mxu1  ;;  %v3061_v14 = vld [vmem:[%s4463_s3 + $0xa0] sm:$0xff] }
  0xc2   :  { %v1301_v35 = vadd.f32 %v1300_v30, %v1288_v29  ;;  %v3071_v29 = vld [vmem:[%s4463_s3 + $0xf0] sm:$0xff] }
  0xc3   :  { %1557 = vmatpush.bf16.msra.mxu3 %v2347_v7  ;;  %1570 = vmatpush.bf16.msra.mxu2 %v2475_v8 }
  0xc4   :  { %1546 = vmatmul.bf16.vlgmr.msrb.gmra.mxu1 %v3340_v53  ;;  %v3046_v53 = vld [vmem:[%s4463_s3 + $0x28] sm:$0xff]  ;;  %v1314_v44 = vadd.f32 %v1313_v33, %v1301_v35 }
  0xc5   :  { %1597 = vmatpush.bf16.msra.mxu1 %v2715_v17  ;;  %1584 = vmatpush.bf16.msra.mxu0 %v2587_v24  ;;  %v3058_v24 = vld [vmem:[%s4463_s3 + $0x88] sm:$0xff] }
  0xc6   :  { %v1327_v47 = vadd.f32 %v1326_v26, %v1314_v44 }
  0xc7   :  { %1558 = vmatpush.bf16.msra.mxu3 %v2331_v21  ;;  %1571 = vmatpush.bf16.msra.mxu2 %v2459_v22 }
  0xc8   :  { %1585 = vmatmul.bf16.vlgmr.msra.gmra.mxu0 %v3559_v39  ;;  %v3054_v39 = vld [vmem:[%s4463_s3 + $0x68] sm:$0xff]  ;;  %v1603_v52 = vmax.f32 %v1327_v47, 0.0  ;;  %v3067_v47 = vld [vmem:[%s4463_s3 + $0xd0] sm:$0xff] }
  0xc9   :  { %1888 = vmatpush.bf16.msrb.mxu1 %v3056_v27  ;;  %v1339_v37 = vpop.f32.mrf.mxu3  ;;  %v1302_v38 = vpop.f32.mrf.mxu0 }
  0xca   :  { %1559 = vmatmul.bf16.vlgmr.msra.gmra.mxu3 %v3353_v60  ;;  %1572 = vmatmul.bf16.vlgmr.msra.gmra.mxu2 %v3548_v34  ;;  %v1328_v60 = vpop.f32.mrf.mxu2  ;;  %v3045_v34 = vld [vmem:[%s4463_s3 + $0x20] sm:$0xff]  ;;  %v1315_v42 = vpop.f32.mrf.mxu1  ;;  %v1607_v55 = vpack.c.bf16 %v1603_v52, %v1603_v52  ;;  %v1340_v62 = vadd.f32 %v1339_v37, %v224_v59  ;;  %v3070_v37 = vld [vmem:[%s4463_s3 + $0xe8] sm:$0xff] }
  0xcb   :  { %1875 = vmatpush.bf16.msrb.mxu3 %v3048_v23  ;;  %1901 = vmatpush.bf16.msrb.mxu2 %v3064_v5  ;;  %v3065_v59 = vld [vmem:[%s4463_s3 + $0xc0] sm:$0xff] }
  0xcd   :  { %1889 = vmatpush.bf16.msrb.mxu1 %v3055_v31 }
  0xcf   :  { %1876 = vmatpush.bf16.msrb.mxu3 %v3047_v28  ;;  %1902 = vmatpush.bf16.msrb.mxu2 %v3063_v6 }
  0xd1   :  { %1890 = vmatpush.bf16.msrb.mxu1 %v3054_v39  ;;  %v1341_v49 = vpop.f32.mrf.mxu3 }
  0xd2   :  { %v1352_v43 = vpop.f32.mrf.mxu2 }
  0xd3   :  { %1877 = vmatpush.bf16.msrb.mxu3 %v3046_v53  ;;  %v1353_v2 = vadd.f32 %v1352_v43, %v1340_v62  ;;  %1903 = vmatpush.bf16.msrb.mxu2 %v3062_v13  ;;  %v1673_v53 = vld [vmem:[%s4463_s3 + $0xf8] sm:$0x3] }
  0xd4   :  { %2719 = vmatmul.msk.bf16.vlgmr.msra.gmra.mxu1 %vm1235_vm0, %v3460_v48  ;;  %v3051_v48 = vld [vmem:[%s4463_s3 + $0x50] sm:$0xff]  ;;  %v1803_v30 = vunpack.c.l.b16 %v1673_v53  ;;  %v3068_v43 = vld [vmem:[%s4463_s3 + $0xd8] sm:$0xff] }
  0xd5   :  { %1891 = vmatpush.bf16.msrb.mxu1 %v3053_v40  ;;  %v3069_v40 = vld [vmem:[%s4463_s3 + $0xe0] sm:$0xff] }
  0xd6   :  { %v1835_v31 = vpack.c.b16 %v1803_v30, %v1803_v30 }
  0xd7   :  { %1878 = vmatpush.bf16.msrb.mxu3 %v3045_v34  ;;  %1904 = vmatpush.bf16.msrb.mxu2 %v3061_v14  ;;  %v225_v34 = vperm.slane %v4324_v10, 2 }
  0xd8   :  { %v1873_v60 = vsel %vm1871_vm1, %v1835_v31, 0 }
  0xd9   :  { %1892 = vmatpush.bf16.msrb.mxu1 %v3052_v45  ;;  %1914 = vmatpush.bf16.msrb.mxu0 %v1873_v60 }
  0xda   :  { %v1354_v51 = vpop.f32.mrf.mxu2 }
  0xdb   :  { %1879 = vmatpush.bf16.msrb.mxu3 %v3044_v36  ;;  %1905 = vmatpush.bf16.msrb.mxu2 %v3060_v20 }
  0xdd   :  { %1893 = vmatpush.bf16.msrb.mxu1 %v3051_v48  ;;  %1915 = vmatpush.bf16.msrb.mxu0 %v3071_v29 }
  0xdf   :  { %1880 = vmatpush.bf16.msrb.mxu3 %v3043_v41  ;;  %1906 = vmatpush.bf16.msrb.mxu2 %v3059_v9 }
  0xe1   :  { %1894 = vmatpush.bf16.msrb.mxu1 %v3050_v54  ;;  %v1365_v58 = vpop.f32.mrf.mxu0  ;;  %v1378_v61 = vpop.f32.mrf.mxu1  ;;  %1916 = vmatpush.bf16.msrb.mxu0 %v3070_v37  ;;  %v3066_v54 = vld [vmem:[%s4463_s3 + $0xc8] sm:$0xff] }
  0xe2   :  { %v1366_v4 = vadd.f32 %v1365_v58, %v1353_v2 }
  0xe3   :  { %1881 = vmatpush.bf16.msrb.mxu3 %v3042_v46  ;;  %1907 = vmatpush.bf16.msrb.mxu2 %v3058_v24 }
  0xe4   :  { %v1379_v8 = vadd.f32 %v1378_v61, %v1366_v4 }
  0xe5   :  { %1895 = vmatpush.bf16.msrb.mxu1 %v3049_v56  ;;  %1917 = vmatpush.bf16.msrb.mxu0 %v3069_v40 }
  0xe7   :  { %1882 = vmatpush.bf16.msrb.mxu3 %v3041_v50  ;;  %1908 = vmatpush.bf16.msrb.mxu2 %v3057_v19 }
  0xe9   :  { %v1391_v63 = vpop.f32.mrf.mxu3  ;;  %v1367_v0 = vpop.f32.mrf.mxu0  ;;  %1918 = vmatpush.bf16.msrb.mxu0 %v3068_v43 }
  0xea   :  { %1883 = vmatmul.bf16.vlgmr.msrb.gmra.mxu3 %v1607_v55  ;;  %v1380_v3 = vpop.f32.mrf.mxu1  ;;  %v1392_v12 = vadd.f32 %v1391_v63, %v1379_v8  ;;  %v226_v63 = vperm.slane %v4324_v10, 3 }
  0xed   :  { %v1404_v1 = vpop.f32.mrf.mxu2  ;;  %1919 = vmatpush.bf16.msrb.mxu0 %v3067_v47 }
  0xee   :  { %v1405_v57 = vadd.f32 %v1404_v1, %v1392_v12 }
  0xf1   :  { %v1393_v7 = vpop.f32.mrf.mxu3  ;;  %1920 = vmatpush.bf16.msrb.mxu0 %v3066_v54 }
  0xf5   :  { %v1406_v11 = vpop.f32.mrf.mxu2  ;;  %1921 = vmatpush.bf16.msrb.mxu0 %v3065_v59 }
  0xf9   :  { %v1417_v15 = vpop.f32.mrf.mxu3 }
  0xfa   :  { %v1418_v16 = vadd.f32 %v1417_v15, %v1405_v57 }
  0xfc   :  { %v1604_v17 = vmax.f32 %v1418_v16, 0.0 }
  0xfe   :  { %v1608_v18 = vpack.c.bf16 %v1604_v17, %v1604_v17 }
 0x100   :  { %1896 = vmatmul.bf16.vlgmr.msrb.gmra.mxu1 %v1608_v18 }
 0x101   :  { %v1419_v21 = vpop.f32.mrf.mxu3  ;;  %v1456_v22 = vpop.f32.mrf.mxu0 }
 0x102   :  { %v1430_v23 = vpop.f32.mrf.mxu1  ;;  %v3072_v21 = vld [vmem:[%s4464_s4] ss:$0 sm:$0xff] }
 0x103   :  { %v1431_v36 = vadd.f32 %v1430_v23, %v225_v34 }
 0x109   :  { %v1458_v26 = vpop.f32.mrf.mxu0 }
 0x10a   :  { %v1432_v28 = vpop.f32.mrf.mxu1 }
 0x10d   :  { %v1443_v25 = vpop.f32.mrf.mxu3  ;;  %v1469_v27 = vpop.f32.mrf.mxu2 }
 0x10e   :  { %v1444_v38 = vadd.f32 %v1443_v25, %v1431_v36 }
 0x110   :  { %v1457_v41 = vadd.f32 %v1456_v22, %v1444_v38 }
 0x111   :  { %v1508_v33 = vpop.f32.mrf.mxu0 }
 0x112   :  { %v1470_v44 = vadd.f32 %v1469_v27, %v1457_v41 }
 0x115   :  { %v1445_v32 = vpop.f32.mrf.mxu3  ;;  %v1471_v39 = vpop.f32.mrf.mxu2 }
 0x119   :  { %v1510_v35 = vpop.f32.mrf.mxu0 }
 0x121   :  { %v1482_v42 = vpop.f32.mrf.mxu1 }
 0x122   :  { %v1483_v46 = vadd.f32 %v1482_v42, %v1470_v44 }
 0x125   :  { %v1534_v45 = vpop.f32.mrf.mxu0 }
 0x129   :  { %v1484_v48 = vpop.f32.mrf.mxu1 }
 0x12d   :  { %v1495_v49 = vpop.f32.mrf.mxu3  ;;  %v1521_v51 = vpop.f32.mrf.mxu2 }
 0x12e   :  { %v1496_v50 = vadd.f32 %v1495_v49, %v1483_v46  ;;  %v1536_v56 = vpop.f32.mrf.mxu0  ;;  %v1522_v0 = vadd.f32 %v1521_v51, %v226_v63 }
 0x130   :  { %v1509_v52 = vadd.f32 %v1508_v33, %v1496_v50  ;;  %v1535_v2 = vadd.f32 %v1534_v45, %v1522_v0 }
 0x132   :  { %v1605_v55 = vmax.f32 %v1509_v52, 0.0 }
 0x134   :  { %v1609_v58 = vpack.c.bf16 %v1605_v55, %v1605_v55 }
 0x135   :  { %v1497_v61 = vpop.f32.mrf.mxu3  ;;  %v1523_v62 = vpop.f32.mrf.mxu2 }
 0x136   :  { %1909 = vmatmul.bf16.vlgmr.msrb.gmra.mxu2 %v1609_v58 }
 0x141   :  { %v1547_v1 = vpop.f32.mrf.mxu1 }
 0x142   :  { %v1548_v4 = vadd.f32 %v1547_v1, %v1535_v2 }
 0x145   :  { %v1586_v3 = vpop.f32.mrf.mxu0 }
 0x149   :  { %v1549_v5 = vpop.f32.mrf.mxu1 }
 0x14d   :  { %v1560_v6 = vpop.f32.mrf.mxu3  ;;  %v1573_v8 = vpop.f32.mrf.mxu2 }
 0x14e   :  { %v1561_v7 = vadd.f32 %v1560_v6, %v1548_v4  ;;  %v1588_v12 = vpop.f32.mrf.mxu0 }
 0x150   :  { %v1574_v11 = vadd.f32 %v1573_v8, %v1561_v7 }
 0x151   :  { %v1599_v57 = vpop.f32.mrf.mxu1 }
 0x152   :  { %v1587_v13 = vadd.f32 %v1586_v3, %v1574_v11 }
 0x154   :  { %v1600_v14 = vadd.f32 %v1599_v57, %v1587_v13 }
 0x155   :  { %v1562_v15 = vpop.f32.mrf.mxu3  ;;  %v1575_v16 = vpop.f32.mrf.mxu2 }
 0x156   :  { %v1606_v17 = vmax.f32 %v1600_v14, 0.0 }
 0x158   :  { %v1610_v18 = vpack.c.bf16 %v1606_v17, %v1606_v17 }
 0x159   :  { %v1601_v10 = vpop.f32.mrf.mxu1 }
 0x15a   :  { %2844 = vmatmul.msk.bf16.vlgmr.msrb.gmra.mxu0 %vm1867_vm2, %v1610_v18 }
 0x16d   :  { %v1884_v20 = vpop.f32.mrf.mxu3 }
 0x16e   :  { %v1885_v22 = vadd.f32 %v3072_v21, %v1884_v20 }
 0x175   :  { %v1886_v9 = vpop.f32.mrf.mxu3 }
 0x17d   :  { %v1897_v23 = vpop.f32.mrf.mxu1 }
 0x17e   :  { %v1898_v24 = vadd.f32 %v1897_v23, %v1885_v22 }
 0x185   :  { %v1899_v25 = vpop.f32.mrf.mxu1 }
 0x1b9   :  { %v1910_v26 = vpop.f32.mrf.mxu2 }
 0x1ba   :  { %v1911_v28 = vadd.f32 %v1910_v26, %v1898_v24 }
 0x1c1   :  { %v1912_v27 = vpop.f32.mrf.mxu2 }
 0x1d7   :  { %v1923_v19 = vpop.f32.mrf.mxu0 }
 0x1d8   :  { %v1924_v53 = vadd.f32 %v1923_v19, %v1911_v28 }
 0x1da   :  { %1927 = vst [vmem:[%s4465_s5] sm:$0xff] %v1924_v53 }
 0x1df   :  { %v1925_v30 = vpop.f32.mrf.mxu0 }

</bundles_post_ra>
